<compile_context>
chip_gen: v7x
topology: tpu7x:2x2x1
jax: 0.10.0
libtpu: 0.0.40
codegen_flags: <defaults>
</compile_context>

<pallas_src>
import jax
import jax.numpy as jnp
from jax.experimental import pallas as pl
from jax.experimental.pallas import tpu as pltpu

EPS = 1e-5
LANE = 128


def _round_up(n, m=LANE):
    return ((n + m - 1) // m) * m


def _bn_train(y, gamma, beta):
    """Training-mode BatchNorm over axis 0 of a (M, C) activation.

    Single fused pass: sum and sum-of-squares together (var = E[x^2]-mean^2),
    then one per-channel scale+shift. All in f32. Zero-padded channels have
    gamma=beta=0 and stay exactly zero.
    """
    m = y.shape[0]
    inv_m = 1.0 / m
    s = jnp.sum(y, axis=0, keepdims=True)
    ss = jnp.sum(y * y, axis=0, keepdims=True)
    mean = s * inv_m
    var = jnp.maximum(ss * inv_m - mean * mean, 0.0)
    scale = gamma * jax.lax.rsqrt(var + EPS)
    shift = beta - mean * scale
    return y * scale + shift


def _make_kernel(N, H, W, Cin_p, Cw_p, Cout_p, stride, has_shortcut):
    H_out = (H - 1) // stride + 1
    W_out = (W - 1) // stride + 1
    span_h = (H_out - 1) * stride + 1
    span_w = (W_out - 1) * stride + 1
    M = N * H * W
    M_out = N * H_out * W_out
    bf16 = jnp.bfloat16

    def kernel(x_ref,
               w1_ref, g1_ref, be1_ref,
               w2_ref, g2_ref, be2_ref,
               w3_ref, g3_ref, be3_ref,
               *rest):
        if has_shortcut:
            ws_ref, gs_ref, bes_ref, out_ref = rest
        else:
            (out_ref,) = rest

        x = x_ref[...]                              # (N, H, W, Cin_p) f32
        xm = x.reshape(M, Cin_p)
        xb = xm.astype(bf16)                        # bf16 MXU operand

        # ---- conv1 (1x1) + bn1 + relu (conv bias removed: BN cancels it) ----
        y1 = jnp.dot(xb, w1_ref[...], preferred_element_type=jnp.float32)
        y1 = jnp.maximum(_bn_train(y1, g1_ref[...], be1_ref[...]), 0.0)

        # ---- conv2: grouped 3x3 as block-diag dense, padding=1, stride ------
        # Zero-pad spatially in-register (no VMEM scratch round-trip).
        y1b = y1.astype(bf16).reshape(N, H, W, Cw_p)
        zrow = jnp.zeros((N, 1, W, Cw_p), bf16)
        zcol = jnp.zeros((N, H + 2, 1, Cw_p), bf16)
        pad = jnp.concatenate([zrow, y1b, zrow], axis=1)
        pad = jnp.concatenate([zcol, pad, zcol], axis=2)
        # im2col: 9 shifted (strided) taps concatenated along K, contracted in
        # a single MXU matmul with K = 9*Cw_p (stride baked into the slices).
        taps = []
        for dy in range(3):
            for dx in range(3):
                if stride == 1:
                    t = pad[:, dy:dy + H, dx:dx + W, :]
                else:
                    t = pad[:, dy:dy + span_h:stride, dx:dx + span_w:stride, :]
                taps.append(t.reshape(M_out, Cw_p))
        patch = jnp.concatenate(taps, axis=1)       # (M_out, 9*Cw_p) bf16
        y2 = jnp.dot(patch, w2_ref[...], preferred_element_type=jnp.float32)
        y2 = jnp.maximum(_bn_train(y2, g2_ref[...], be2_ref[...]), 0.0)

        # ---- conv3 (1x1) + bn3 ----------------------------------------------
        y3 = jnp.dot(y2.astype(bf16), w3_ref[...],
                     preferred_element_type=jnp.float32)
        y3 = _bn_train(y3, g3_ref[...], be3_ref[...])

        # ---- shortcut ---------------------------------------------------------
        if has_shortcut:
            if stride > 1:
                xsb = x[:, ::stride, ::stride, :].reshape(M_out, Cin_p).astype(bf16)
            else:
                xsb = xb
            sc = jnp.dot(xsb, ws_ref[...], preferred_element_type=jnp.float32)
            sc = _bn_train(sc, gs_ref[...], bes_ref[...])
        else:
            sc = xm                                  # identity (Cin==Cout, s=1)

        out = jnp.maximum(y3 + sc, 0.0)
        out_ref[...] = out.reshape(N, H_out, W_out, Cout_p)

    return kernel


def _full_spec(shape):
    nd = len(shape)
    return pl.BlockSpec(shape, lambda i, _nd=nd: (0,) * _nd)


def resnext_block(x_nchw, params, *, stride, cardinality):
    """Pallas forward of ResNeXtBlock. Input/output are NCHW like PyTorch."""
    N, Cin, H, W = x_nchw.shape
    width = params["w1"].shape[0]
    c_out = params["w3"].shape[0]
    has_shortcut = "ws" in params
    if not has_shortcut:
        assert Cin == c_out and stride == 1, "identity shortcut requires Cin==Cout, stride==1"

    H_out = (H - 1) // stride + 1
    W_out = (W - 1) // stride + 1

    # Lane-pad every channel dim to a multiple of 128 (lane-dense intermediates).
    Cin_p = _round_up(Cin)
    Cw_p = _round_up(width)
    Cout_p = _round_up(c_out)

    # --- activations: NCHW -> NHWC, zero-pad channels ---
    x = jnp.transpose(x_nchw, (0, 2, 3, 1)).astype(jnp.float32)
    x = jnp.pad(x, ((0, 0), (0, 0), (0, 0), (0, Cin_p - Cin)))

    # --- 1x1 conv weights -> padded bf16 (Cin, Cout) matrices ---
    def mat(w, rows, cols):                      # w: (cout, cin, 1, 1)
        m = jnp.transpose(w[:, :, 0, 0], (1, 0)).astype(jnp.float32)
        m = jnp.pad(m, ((0, rows - m.shape[0]), (0, cols - m.shape[1])))
        return m.astype(jnp.bfloat16)

    w1 = mat(params["w1"], Cin_p, Cw_p)
    w3 = mat(params["w3"], Cw_p, Cout_p)

    # --- grouped 3x3 -> block-diagonal dense (kh,kw,cin,cout), lane-padded,
    #     flattened to (9*Cw_p, Cw_p) so conv2 is a single im2col matmul. ---
    # TODO(synk): for production cardinality (e.g. 32) the dense block-diagonal
    # expansion inflates conv2 FLOPs/weight bytes by `cardinality`; pack several
    # groups per 128-lane tile (group-batched einsum) instead.
    gw = width // cardinality
    w2_dense = jnp.zeros((width, width, 3, 3), jnp.float32)
    for g in range(cardinality):
        sl = slice(g * gw, (g + 1) * gw)
        w2_dense = w2_dense.at[sl, sl].set(params["w2"][sl].astype(jnp.float32))
    w2 = jnp.transpose(w2_dense, (2, 3, 1, 0))           # (kh, kw, cin, cout)
    w2 = jnp.pad(w2, ((0, 0), (0, 0), (0, Cw_p - width), (0, Cw_p - width)))
    w2 = w2.reshape(9 * Cw_p, Cw_p).astype(jnp.bfloat16)

    def vec(v, n):
        v = v.astype(jnp.float32)
        return jnp.pad(v, (0, n - v.shape[0])).reshape(1, n)

    # NOTE: conv biases b1/b2/b3/bs are intentionally not passed: a per-channel
    # constant added before a training-mode BatchNorm is removed by the mean
    # subtraction, so they are dead compute.
    args = [x,
            w1, vec(params["g1"], Cw_p), vec(params["be1"], Cw_p),
            w2, vec(params["g2"], Cw_p), vec(params["be2"], Cw_p),
            w3, vec(params["g3"], Cout_p), vec(params["be3"], Cout_p)]
    if has_shortcut:
        args += [mat(params["ws"], Cin_p, Cout_p),
                 vec(params["gs"], Cout_p), vec(params["bes"], Cout_p)]

    kernel = _make_kernel(N, H, W, Cin_p, Cw_p, Cout_p, stride, has_shortcut)

    out_bytes = N * H_out * W_out * Cout_p * 4
    total_bytes = sum(int(a.size) * a.dtype.itemsize for a in args) + out_bytes
    vmem_limit = int(min(max(4 * total_bytes, 32 * 1024 * 1024), 64 * 1024 * 1024))

    # TODO(synk): at production shapes, tile M=N*H*W with a "parallel" grid axis
    # and a two-pass (accumulate sum/sumsq, then normalize) BatchNorm so the
    # working set fits v7x's 64 MiB VMEM and both TensorCores are used; with a
    # monolithic whole-batch BN the grid must stay single-step to keep batch
    # statistics exact.
    out_nhwc = pl.pallas_call(
        kernel,
        out_shape=jax.ShapeDtypeStruct((N, H_out, W_out, Cout_p), jnp.float32),
        grid=(1,),
        in_specs=[_full_spec(a.shape) for a in args],
        out_specs=_full_spec((N, H_out, W_out, Cout_p)),
        compiler_params=pltpu.CompilerParams(
            dimension_semantics=("arbitrary",),
            vmem_limit_bytes=vmem_limit),
    )(*args)

    out_nhwc = out_nhwc[..., :c_out]                     # drop lane padding
    return jnp.transpose(out_nhwc, (0, 3, 1, 2))         # back to NCHW


# ------------------------- parameter init (deterministic) -------------------
def init_params(key, in_channels, out_channels, cardinality, base_width, stride):
    expansion = 4
    width = int(out_channels * (base_width / 64.0)) * cardinality
    c_out = out_channels * expansion
    ks = jax.random.split(key, 16)

    def rnd(k, shape, scale=0.1):
        return scale * jax.random.normal(k, shape, jnp.float32)

    p = dict(
        w1=rnd(ks[0], (width, in_channels, 1, 1)),
        b1=rnd(ks[1], (width,)),
        g1=1.0 + rnd(ks[2], (width,)),
        be1=rnd(ks[3], (width,)),
        w2=rnd(ks[4], (width, width // cardinality, 3, 3)),
        b2=rnd(ks[5], (width,)),
        g2=1.0 + rnd(ks[6], (width,)),
        be2=rnd(ks[7], (width,)),
        w3=rnd(ks[8], (c_out, width, 1, 1)),
        b3=rnd(ks[9], (c_out,)),
        g3=1.0 + rnd(ks[10], (c_out,)),
        be3=rnd(ks[11], (c_out,)),
    )
    if stride != 1 or in_channels != c_out:
        p.update(
            ws=rnd(ks[12], (c_out, in_channels, 1, 1)),
            bs=rnd(ks[13], (c_out,)),
            gs=1.0 + rnd(ks[14], (c_out,)),
            bes=rnd(ks[15], (c_out,)),
        )
    return p


# ------------------------- pure-JAX reference (NCHW, f32) --------------------
def reference_forward(x, p, stride, cardinality):
    def conv(x, w, b, stride=1, padding=0, groups=1):
        y = jax.lax.conv_general_dilated(
            x, w, window_strides=(stride, stride),
            padding=[(padding, padding), (padding, padding)],
            dimension_numbers=("NCHW", "OIHW", "NCHW"),
            feature_group_count=groups,
            precision=jax.lax.Precision.HIGHEST)
        return y + b.reshape(1, -1, 1, 1)

    def bn(x, g, bta):
        mean = jnp.mean(x, axis=(0, 2, 3), keepdims=True)
        var = jnp.mean(jnp.square(x - mean), axis=(0, 2, 3), keepdims=True)
        return (g.reshape(1, -1, 1, 1) * (x - mean) * jax.lax.rsqrt(var + EPS)
                + bta.reshape(1, -1, 1, 1))

    y = jax.nn.relu(bn(conv(x, p["w1"], p["b1"]), p["g1"], p["be1"]))
    y = jax.nn.relu(bn(conv(y, p["w2"], p["b2"], stride=stride, padding=1,
                            groups=cardinality), p["g2"], p["be2"]))
    y = bn(conv(y, p["w3"], p["b3"]), p["g3"], p["be3"])
    if "ws" in p:
        s = bn(conv(x, p["ws"], p["bs"], stride=stride), p["gs"], p["bes"])
    else:
        s = x
    return jax.nn.relu(y + s)


if __name__ == "__main__":
    # Small ResNeXt block: in=16, out=32, cardinality=4, base_width=4, stride=1
    # -> width = int(32 * 4/64) * 4 = 8, output channels = 32 * 4 = 128.
    N, Cin, H, W = 2, 16, 8, 8
    out_channels, cardinality, base_width, stride = 32, 4, 4, 1

    key = jax.random.PRNGKey(0)
    kx, kp = jax.random.split(key)
    x = jax.random.normal(kx, (N, Cin, H, W), jnp.float32)
    params = init_params(kp, Cin, out_channels, cardinality, base_width, stride)

    y = resnext_block(x, params, stride=stride, cardinality=cardinality)
    y = jax.block_until_ready(y)

    y_ref = reference_forward(x, params, stride, cardinality)
    assert y.shape == y_ref.shape, (y.shape, y_ref.shape)
    # Kernel uses bf16 MXU operands with f32 accumulation (per perf review);
    # reference is full-f32 HIGHEST precision, so allow a bf16-level tolerance.
    max_err = float(jnp.max(jnp.abs(y - y_ref)))
    if max_err > 5e-2:
        raise AssertionError(f"Pallas/reference mismatch, max abs err {max_err}")

    print("KERNEL_OK")
</pallas_src>

<mosaic_0001>
module attributes {stable_mosaic.version = 11 : i64} {
  func.func @kernel(%arg0: i32, %arg1: memref<2x8x8x128xf32, #tpu.memory_space<vmem>>, %arg2: memref<128x128xbf16, #tpu.memory_space<vmem>>, %arg3: memref<1x128xf32, #tpu.memory_space<vmem>>, %arg4: memref<1x128xf32, #tpu.memory_space<vmem>>, %arg5: memref<1152x128xbf16, #tpu.memory_space<vmem>>, %arg6: memref<1x128xf32, #tpu.memory_space<vmem>>, %arg7: memref<1x128xf32, #tpu.memory_space<vmem>>, %arg8: memref<128x128xbf16, #tpu.memory_space<vmem>>, %arg9: memref<1x128xf32, #tpu.memory_space<vmem>>, %arg10: memref<1x128xf32, #tpu.memory_space<vmem>>, %arg11: memref<128x128xbf16, #tpu.memory_space<vmem>>, %arg12: memref<1x128xf32, #tpu.memory_space<vmem>>, %arg13: memref<1x128xf32, #tpu.memory_space<vmem>>, %arg14: memref<2x8x8x128xf32, #tpu.memory_space<vmem>>) attributes {dimension_semantics = [#tpu.dimension_semantics<arbitrary>], iteration_bounds = array<i64: 1>, scalar_prefetch = 0 : i64, scratch_operands = 0 : i64, tpu.core_type = #tpu.core_type<tc>, window_params = [{pipeline_mode = #tpu.pipeline_mode<synchronous>, transform_indices = @transform_0, window_bounds = array<i64: 2, 8, 8, 128>}, {pipeline_mode = #tpu.pipeline_mode<synchronous>, transform_indices = @transform_1, window_bounds = array<i64: 128, 128>}, {pipeline_mode = #tpu.pipeline_mode<synchronous>, transform_indices = @transform_2, window_bounds = array<i64: 1, 128>}, {pipeline_mode = #tpu.pipeline_mode<synchronous>, transform_indices = @transform_3, window_bounds = array<i64: 1, 128>}, {pipeline_mode = #tpu.pipeline_mode<synchronous>, transform_indices = @transform_4, window_bounds = array<i64: 1152, 128>}, {pipeline_mode = #tpu.pipeline_mode<synchronous>, transform_indices = @transform_5, window_bounds = array<i64: 1, 128>}, {pipeline_mode = #tpu.pipeline_mode<synchronous>, transform_indices = @transform_6, window_bounds = array<i64: 1, 128>}, {pipeline_mode = #tpu.pipeline_mode<synchronous>, transform_indices = @transform_7, window_bounds = array<i64: 128, 128>}, {pipeline_mode = #tpu.pipeline_mode<synchronous>, transform_indices = @transform_8, window_bounds = array<i64: 1, 128>}, {pipeline_mode = #tpu.pipeline_mode<synchronous>, transform_indices = @transform_9, window_bounds = array<i64: 1, 128>}, {pipeline_mode = #tpu.pipeline_mode<synchronous>, transform_indices = @transform_10, window_bounds = array<i64: 128, 128>}, {pipeline_mode = #tpu.pipeline_mode<synchronous>, transform_indices = @transform_11, window_bounds = array<i64: 1, 128>}, {pipeline_mode = #tpu.pipeline_mode<synchronous>, transform_indices = @transform_12, window_bounds = array<i64: 1, 128>}, {pipeline_mode = #tpu.pipeline_mode<synchronous>, transform_indices = @transform_13, window_bounds = array<i64: 2, 8, 8, 128>}]} {
    %c0 = arith.constant 0 : index
    %c0_0 = arith.constant 0 : index
    %c0_1 = arith.constant 0 : index
    %c0_2 = arith.constant 0 : index
    %0 = vector.load %arg1[%c0, %c0_0, %c0_1, %c0_2] : memref<2x8x8x128xf32, #tpu.memory_space<vmem>>, vector<2x8x8x128xf32>
    %1 = vector.shape_cast %0 : vector<2x8x8x128xf32> to vector<128x128xf32>
    %2 = arith.truncf %1 : vector<128x128xf32> to vector<128x128xbf16>
    %c0_3 = arith.constant 0 : index
    %c0_4 = arith.constant 0 : index
    %3 = vector.load %arg2[%c0_3, %c0_4] : memref<128x128xbf16, #tpu.memory_space<vmem>>, vector<128x128xbf16>
    %cst = arith.constant dense<0.000000e+00> : vector<128x128xf32>
    %4 = tpu.matmul %2, %3, %cst {dimension_numbers = #tpu.dot_dimension_numbers<[1], [0], [0], [1], [0, 0, 1, 1], [], []>} : vector<128x128xbf16>, vector<128x128xbf16>, vector<128x128xf32> -> vector<128x128xf32>
    %c0_5 = arith.constant 0 : index
    %c0_6 = arith.constant 0 : index
    %5 = vector.load %arg3[%c0_5, %c0_6] : memref<1x128xf32, #tpu.memory_space<vmem>>, vector<1x128xf32>
    %c0_7 = arith.constant 0 : index
    %c0_8 = arith.constant 0 : index
    %6 = vector.load %arg4[%c0_7, %c0_8] : memref<1x128xf32, #tpu.memory_space<vmem>>, vector<1x128xf32>
    %cst_9 = arith.constant dense<0.000000e+00> : vector<128xf32>
    %7 = vector.multi_reduction <add>, %4, %cst_9 [0] : vector<128x128xf32> to vector<128xf32>
    %8 = vector.shape_cast %7 : vector<128xf32> to vector<1x128xf32>
    %9 = arith.mulf %4, %4 : vector<128x128xf32>
    %cst_10 = arith.constant dense<0.000000e+00> : vector<128xf32>
    %10 = vector.multi_reduction <add>, %9, %cst_10 [0] : vector<128x128xf32> to vector<128xf32>
    %11 = vector.shape_cast %10 : vector<128xf32> to vector<1x128xf32>
    %cst_11 = arith.constant 7.812500e-03 : f32
    %12 = vector.broadcast %cst_11 : f32 to vector<1x128xf32>
    %13 = arith.mulf %8, %12 : vector<1x128xf32>
    %cst_12 = arith.constant 7.812500e-03 : f32
    %14 = vector.broadcast %cst_12 : f32 to vector<1x128xf32>
    %15 = arith.mulf %11, %14 : vector<1x128xf32>
    %16 = arith.mulf %13, %13 : vector<1x128xf32>
    %17 = arith.subf %15, %16 : vector<1x128xf32>
    %cst_13 = arith.constant 0.000000e+00 : f32
    %18 = vector.broadcast %cst_13 : f32 to vector<1x128xf32>
    %19 = arith.maximumf %17, %18 : vector<1x128xf32>
    %cst_14 = arith.constant 9.99999974E-6 : f32
    %20 = vector.broadcast %cst_14 : f32 to vector<1x128xf32>
    %21 = arith.addf %19, %20 : vector<1x128xf32>
    %22 = math.rsqrt %21 : vector<1x128xf32>
    %23 = arith.mulf %5, %22 : vector<1x128xf32>
    %24 = arith.mulf %13, %23 : vector<1x128xf32>
    %25 = arith.subf %6, %24 : vector<1x128xf32>
    %26 = vector.broadcast %23 : vector<1x128xf32> to vector<128x128xf32>
    %27 = arith.mulf %4, %26 : vector<128x128xf32>
    %28 = vector.broadcast %25 : vector<1x128xf32> to vector<128x128xf32>
    %29 = arith.addf %27, %28 : vector<128x128xf32>
    %cst_15 = arith.constant 0.000000e+00 : f32
    %30 = vector.broadcast %cst_15 : f32 to vector<128x128xf32>
    %31 = arith.maximumf %29, %30 : vector<128x128xf32>
    %32 = arith.truncf %31 : vector<128x128xf32> to vector<128x128xbf16>
    %33 = vector.shape_cast %32 : vector<128x128xbf16> to vector<2x8x8x128xbf16>
    %cst_16 = arith.constant 0.000000e+00 : bf16
    %34 = vector.broadcast %cst_16 : bf16 to vector<2x1x8x128xbf16>
    %cst_17 = arith.constant 0.000000e+00 : bf16
    %35 = vector.broadcast %cst_17 : bf16 to vector<2x10x1x128xbf16>
    %36 = tpu.concatenate %34, %33, %34 in 1 : vector<2x1x8x128xbf16>, vector<2x8x8x128xbf16>, vector<2x1x8x128xbf16> -> vector<2x10x8x128xbf16>
    %37 = tpu.concatenate %35, %36, %35 in 2 : vector<2x10x1x128xbf16>, vector<2x10x8x128xbf16>, vector<2x10x1x128xbf16> -> vector<2x10x10x128xbf16>
    %38 = vector.extract_strided_slice %37 {offsets = [0, 0, 0, 0], sizes = [2, 8, 8, 128], strides = [1, 1, 1, 1]} : vector<2x10x10x128xbf16> to vector<2x8x8x128xbf16>
    %39 = vector.shape_cast %38 : vector<2x8x8x128xbf16> to vector<128x128xbf16>
    %40 = vector.extract_strided_slice %37 {offsets = [0, 0, 1, 0], sizes = [2, 8, 8, 128], strides = [1, 1, 1, 1]} : vector<2x10x10x128xbf16> to vector<2x8x8x128xbf16>
    %41 = vector.shape_cast %40 : vector<2x8x8x128xbf16> to vector<128x128xbf16>
    %42 = vector.extract_strided_slice %37 {offsets = [0, 0, 2, 0], sizes = [2, 8, 8, 128], strides = [1, 1, 1, 1]} : vector<2x10x10x128xbf16> to vector<2x8x8x128xbf16>
    %43 = vector.shape_cast %42 : vector<2x8x8x128xbf16> to vector<128x128xbf16>
    %44 = vector.extract_strided_slice %37 {offsets = [0, 1, 0, 0], sizes = [2, 8, 8, 128], strides = [1, 1, 1, 1]} : vector<2x10x10x128xbf16> to vector<2x8x8x128xbf16>
    %45 = vector.shape_cast %44 : vector<2x8x8x128xbf16> to vector<128x128xbf16>
    %46 = vector.extract_strided_slice %37 {offsets = [0, 1, 1, 0], sizes = [2, 8, 8, 128], strides = [1, 1, 1, 1]} : vector<2x10x10x128xbf16> to vector<2x8x8x128xbf16>
    %47 = vector.shape_cast %46 : vector<2x8x8x128xbf16> to vector<128x128xbf16>
    %48 = vector.extract_strided_slice %37 {offsets = [0, 1, 2, 0], sizes = [2, 8, 8, 128], strides = [1, 1, 1, 1]} : vector<2x10x10x128xbf16> to vector<2x8x8x128xbf16>
    %49 = vector.shape_cast %48 : vector<2x8x8x128xbf16> to vector<128x128xbf16>
    %50 = vector.extract_strided_slice %37 {offsets = [0, 2, 0, 0], sizes = [2, 8, 8, 128], strides = [1, 1, 1, 1]} : vector<2x10x10x128xbf16> to vector<2x8x8x128xbf16>
    %51 = vector.shape_cast %50 : vector<2x8x8x128xbf16> to vector<128x128xbf16>
    %52 = vector.extract_strided_slice %37 {offsets = [0, 2, 1, 0], sizes = [2, 8, 8, 128], strides = [1, 1, 1, 1]} : vector<2x10x10x128xbf16> to vector<2x8x8x128xbf16>
    %53 = vector.shape_cast %52 : vector<2x8x8x128xbf16> to vector<128x128xbf16>
    %54 = vector.extract_strided_slice %37 {offsets = [0, 2, 2, 0], sizes = [2, 8, 8, 128], strides = [1, 1, 1, 1]} : vector<2x10x10x128xbf16> to vector<2x8x8x128xbf16>
    %55 = vector.shape_cast %54 : vector<2x8x8x128xbf16> to vector<128x128xbf16>
    %56 = tpu.concatenate %39, %41, %43, %45, %47, %49, %51, %53, %55 in 1 : vector<128x128xbf16>, vector<128x128xbf16>, vector<128x128xbf16>, vector<128x128xbf16>, vector<128x128xbf16>, vector<128x128xbf16>, vector<128x128xbf16>, vector<128x128xbf16>, vector<128x128xbf16> -> vector<128x1152xbf16>
    %c0_18 = arith.constant 0 : index
    %c0_19 = arith.constant 0 : index
    %57 = vector.load %arg5[%c0_18, %c0_19] : memref<1152x128xbf16, #tpu.memory_space<vmem>>, vector<1152x128xbf16>
    %cst_20 = arith.constant dense<0.000000e+00> : vector<128x128xf32>
    %58 = tpu.matmul %56, %57, %cst_20 {dimension_numbers = #tpu.dot_dimension_numbers<[1], [0], [0], [1], [0, 0, 1, 1], [], []>} : vector<128x1152xbf16>, vector<1152x128xbf16>, vector<128x128xf32> -> vector<128x128xf32>
    %c0_21 = arith.constant 0 : index
    %c0_22 = arith.constant 0 : index
    %59 = vector.load %arg6[%c0_21, %c0_22] : memref<1x128xf32, #tpu.memory_space<vmem>>, vector<1x128xf32>
    %c0_23 = arith.constant 0 : index
    %c0_24 = arith.constant 0 : index
    %60 = vector.load %arg7[%c0_23, %c0_24] : memref<1x128xf32, #tpu.memory_space<vmem>>, vector<1x128xf32>
    %cst_25 = arith.constant dense<0.000000e+00> : vector<128xf32>
    %61 = vector.multi_reduction <add>, %58, %cst_25 [0] : vector<128x128xf32> to vector<128xf32>
    %62 = vector.shape_cast %61 : vector<128xf32> to vector<1x128xf32>
    %63 = arith.mulf %58, %58 : vector<128x128xf32>
    %cst_26 = arith.constant dense<0.000000e+00> : vector<128xf32>
    %64 = vector.multi_reduction <add>, %63, %cst_26 [0] : vector<128x128xf32> to vector<128xf32>
    %65 = vector.shape_cast %64 : vector<128xf32> to vector<1x128xf32>
    %cst_27 = arith.constant 7.812500e-03 : f32
    %66 = vector.broadcast %cst_27 : f32 to vector<1x128xf32>
    %67 = arith.mulf %62, %66 : vector<1x128xf32>
    %cst_28 = arith.constant 7.812500e-03 : f32
    %68 = vector.broadcast %cst_28 : f32 to vector<1x128xf32>
    %69 = arith.mulf %65, %68 : vector<1x128xf32>
    %70 = arith.mulf %67, %67 : vector<1x128xf32>
    %71 = arith.subf %69, %70 : vector<1x128xf32>
    %cst_29 = arith.constant 0.000000e+00 : f32
    %72 = vector.broadcast %cst_29 : f32 to vector<1x128xf32>
    %73 = arith.maximumf %71, %72 : vector<1x128xf32>
    %cst_30 = arith.constant 9.99999974E-6 : f32
    %74 = vector.broadcast %cst_30 : f32 to vector<1x128xf32>
    %75 = arith.addf %73, %74 : vector<1x128xf32>
    %76 = math.rsqrt %75 : vector<1x128xf32>
    %77 = arith.mulf %59, %76 : vector<1x128xf32>
    %78 = arith.mulf %67, %77 : vector<1x128xf32>
    %79 = arith.subf %60, %78 : vector<1x128xf32>
    %80 = vector.broadcast %77 : vector<1x128xf32> to vector<128x128xf32>
    %81 = arith.mulf %58, %80 : vector<128x128xf32>
    %82 = vector.broadcast %79 : vector<1x128xf32> to vector<128x128xf32>
    %83 = arith.addf %81, %82 : vector<128x128xf32>
    %cst_31 = arith.constant 0.000000e+00 : f32
    %84 = vector.broadcast %cst_31 : f32 to vector<128x128xf32>
    %85 = arith.maximumf %83, %84 : vector<128x128xf32>
    %86 = arith.truncf %85 : vector<128x128xf32> to vector<128x128xbf16>
    %c0_32 = arith.constant 0 : index
    %c0_33 = arith.constant 0 : index
    %87 = vector.load %arg8[%c0_32, %c0_33] : memref<128x128xbf16, #tpu.memory_space<vmem>>, vector<128x128xbf16>
    %cst_34 = arith.constant dense<0.000000e+00> : vector<128x128xf32>
    %88 = tpu.matmul %86, %87, %cst_34 {dimension_numbers = #tpu.dot_dimension_numbers<[1], [0], [0], [1], [0, 0, 1, 1], [], []>} : vector<128x128xbf16>, vector<128x128xbf16>, vector<128x128xf32> -> vector<128x128xf32>
    %c0_35 = arith.constant 0 : index
    %c0_36 = arith.constant 0 : index
    %89 = vector.load %arg9[%c0_35, %c0_36] : memref<1x128xf32, #tpu.memory_space<vmem>>, vector<1x128xf32>
    %c0_37 = arith.constant 0 : index
    %c0_38 = arith.constant 0 : index
    %90 = vector.load %arg10[%c0_37, %c0_38] : memref<1x128xf32, #tpu.memory_space<vmem>>, vector<1x128xf32>
    %cst_39 = arith.constant dense<0.000000e+00> : vector<128xf32>
    %91 = vector.multi_reduction <add>, %88, %cst_39 [0] : vector<128x128xf32> to vector<128xf32>
    %92 = vector.shape_cast %91 : vector<128xf32> to vector<1x128xf32>
    %93 = arith.mulf %88, %88 : vector<128x128xf32>
    %cst_40 = arith.constant dense<0.000000e+00> : vector<128xf32>
    %94 = vector.multi_reduction <add>, %93, %cst_40 [0] : vector<128x128xf32> to vector<128xf32>
    %95 = vector.shape_cast %94 : vector<128xf32> to vector<1x128xf32>
    %cst_41 = arith.constant 7.812500e-03 : f32
    %96 = vector.broadcast %cst_41 : f32 to vector<1x128xf32>
    %97 = arith.mulf %92, %96 : vector<1x128xf32>
    %cst_42 = arith.constant 7.812500e-03 : f32
    %98 = vector.broadcast %cst_42 : f32 to vector<1x128xf32>
    %99 = arith.mulf %95, %98 : vector<1x128xf32>
    %100 = arith.mulf %97, %97 : vector<1x128xf32>
    %101 = arith.subf %99, %100 : vector<1x128xf32>
    %cst_43 = arith.constant 0.000000e+00 : f32
    %102 = vector.broadcast %cst_43 : f32 to vector<1x128xf32>
    %103 = arith.maximumf %101, %102 : vector<1x128xf32>
    %cst_44 = arith.constant 9.99999974E-6 : f32
    %104 = vector.broadcast %cst_44 : f32 to vector<1x128xf32>
    %105 = arith.addf %103, %104 : vector<1x128xf32>
    %106 = math.rsqrt %105 : vector<1x128xf32>
    %107 = arith.mulf %89, %106 : vector<1x128xf32>
    %108 = arith.mulf %97, %107 : vector<1x128xf32>
    %109 = arith.subf %90, %108 : vector<1x128xf32>
    %110 = vector.broadcast %107 : vector<1x128xf32> to vector<128x128xf32>
    %111 = arith.mulf %88, %110 : vector<128x128xf32>
    %112 = vector.broadcast %109 : vector<1x128xf32> to vector<128x128xf32>
    %113 = arith.addf %111, %112 : vector<128x128xf32>
    %c0_45 = arith.constant 0 : index
    %c0_46 = arith.constant 0 : index
    %114 = vector.load %arg11[%c0_45, %c0_46] : memref<128x128xbf16, #tpu.memory_space<vmem>>, vector<128x128xbf16>
    %cst_47 = arith.constant dense<0.000000e+00> : vector<128x128xf32>
    %115 = tpu.matmul %2, %114, %cst_47 {dimension_numbers = #tpu.dot_dimension_numbers<[1], [0], [0], [1], [0, 0, 1, 1], [], []>} : vector<128x128xbf16>, vector<128x128xbf16>, vector<128x128xf32> -> vector<128x128xf32>
    %c0_48 = arith.constant 0 : index
    %c0_49 = arith.constant 0 : index
    %116 = vector.load %arg12[%c0_48, %c0_49] : memref<1x128xf32, #tpu.memory_space<vmem>>, vector<1x128xf32>
    %c0_50 = arith.constant 0 : index
    %c0_51 = arith.constant 0 : index
    %117 = vector.load %arg13[%c0_50, %c0_51] : memref<1x128xf32, #tpu.memory_space<vmem>>, vector<1x128xf32>
    %cst_52 = arith.constant dense<0.000000e+00> : vector<128xf32>
    %118 = vector.multi_reduction <add>, %115, %cst_52 [0] : vector<128x128xf32> to vector<128xf32>
    %119 = vector.shape_cast %118 : vector<128xf32> to vector<1x128xf32>
    %120 = arith.mulf %115, %115 : vector<128x128xf32>
    %cst_53 = arith.constant dense<0.000000e+00> : vector<128xf32>
    %121 = vector.multi_reduction <add>, %120, %cst_53 [0] : vector<128x128xf32> to vector<128xf32>
    %122 = vector.shape_cast %121 : vector<128xf32> to vector<1x128xf32>
    %cst_54 = arith.constant 7.812500e-03 : f32
    %123 = vector.broadcast %cst_54 : f32 to vector<1x128xf32>
    %124 = arith.mulf %119, %123 : vector<1x128xf32>
    %cst_55 = arith.constant 7.812500e-03 : f32
    %125 = vector.broadcast %cst_55 : f32 to vector<1x128xf32>
    %126 = arith.mulf %122, %125 : vector<1x128xf32>
    %127 = arith.mulf %124, %124 : vector<1x128xf32>
    %128 = arith.subf %126, %127 : vector<1x128xf32>
    %cst_56 = arith.constant 0.000000e+00 : f32
    %129 = vector.broadcast %cst_56 : f32 to vector<1x128xf32>
    %130 = arith.maximumf %128, %129 : vector<1x128xf32>
    %cst_57 = arith.constant 9.99999974E-6 : f32
    %131 = vector.broadcast %cst_57 : f32 to vector<1x128xf32>
    %132 = arith.addf %130, %131 : vector<1x128xf32>
    %133 = math.rsqrt %132 : vector<1x128xf32>
    %134 = arith.mulf %116, %133 : vector<1x128xf32>
    %135 = arith.mulf %124, %134 : vector<1x128xf32>
    %136 = arith.subf %117, %135 : vector<1x128xf32>
    %137 = vector.broadcast %134 : vector<1x128xf32> to vector<128x128xf32>
    %138 = arith.mulf %115, %137 : vector<128x128xf32>
    %139 = vector.broadcast %136 : vector<1x128xf32> to vector<128x128xf32>
    %140 = arith.addf %138, %139 : vector<128x128xf32>
    %141 = arith.addf %113, %140 : vector<128x128xf32>
    %cst_58 = arith.constant 0.000000e+00 : f32
    %142 = vector.broadcast %cst_58 : f32 to vector<128x128xf32>
    %143 = arith.maximumf %141, %142 : vector<128x128xf32>
    %144 = vector.shape_cast %143 : vector<128x128xf32> to vector<2x8x8x128xf32>
    %c0_59 = arith.constant 0 : index
    %c0_60 = arith.constant 0 : index
    %c0_61 = arith.constant 0 : index
    %c0_62 = arith.constant 0 : index
    %145 = vector.load %arg14[%c0_59, %c0_60, %c0_61, %c0_62] : memref<2x8x8x128xf32, #tpu.memory_space<vmem>>, vector<2x8x8x128xf32>
    tpu.vector_store %arg14[%c0_59, %c0_60, %c0_61, %c0_62], %144 {strides = array<i32>} : memref<2x8x8x128xf32, #tpu.memory_space<vmem>>, vector<2x8x8x128xf32>,
    return
  }
  func.func @transform_0(%arg0: i32) -> (i32, i32, i32, i32) {
    %c0_i32 = arith.constant 0 : i32
    %c0_i32_0 = arith.constant 0 : i32
    %c0_i32_1 = arith.constant 0 : i32
    %c0_i32_2 = arith.constant 0 : i32
    %c0_i32_3 = arith.constant 0 : i32
    return %c0_i32, %c0_i32_0, %c0_i32_1, %c0_i32_2 : i32, i32, i32, i32
  }
  func.func @transform_1(%arg0: i32) -> (i32, i32) {
    %c0_i32 = arith.constant 0 : i32
    %c0_i32_0 = arith.constant 0 : i32
    %c0_i32_1 = arith.constant 0 : i32
    return %c0_i32, %c0_i32_0 : i32, i32
  }
  func.func @transform_2(%arg0: i32) -> (i32, i32) {
    %c0_i32 = arith.constant 0 : i32
    %c0_i32_0 = arith.constant 0 : i32
    %c0_i32_1 = arith.constant 0 : i32
    return %c0_i32, %c0_i32_0 : i32, i32
  }
  func.func @transform_3(%arg0: i32) -> (i32, i32) {
    %c0_i32 = arith.constant 0 : i32
    %c0_i32_0 = arith.constant 0 : i32
    %c0_i32_1 = arith.constant 0 : i32
    return %c0_i32, %c0_i32_0 : i32, i32
  }
  func.func @transform_4(%arg0: i32) -> (i32, i32) {
    %c0_i32 = arith.constant 0 : i32
    %c0_i32_0 = arith.constant 0 : i32
    %c0_i32_1 = arith.constant 0 : i32
    return %c0_i32, %c0_i32_0 : i32, i32
  }
  func.func @transform_5(%arg0: i32) -> (i32, i32) {
    %c0_i32 = arith.constant 0 : i32
    %c0_i32_0 = arith.constant 0 : i32
    %c0_i32_1 = arith.constant 0 : i32
    return %c0_i32, %c0_i32_0 : i32, i32
  }
  func.func @transform_6(%arg0: i32) -> (i32, i32) {
    %c0_i32 = arith.constant 0 : i32
    %c0_i32_0 = arith.constant 0 : i32
    %c0_i32_1 = arith.constant 0 : i32
    return %c0_i32, %c0_i32_0 : i32, i32
  }
  func.func @transform_7(%arg0: i32) -> (i32, i32) {
    %c0_i32 = arith.constant 0 : i32
    %c0_i32_0 = arith.constant 0 : i32
    %c0_i32_1 = arith.constant 0 : i32
    return %c0_i32, %c0_i32_0 : i32, i32
  }
  func.func @transform_8(%arg0: i32) -> (i32, i32) {
    %c0_i32 = arith.constant 0 : i32
    %c0_i32_0 = arith.constant 0 : i32
    %c0_i32_1 = arith.constant 0 : i32
    return %c0_i32, %c0_i32_0 : i32, i32
  }
  func.func @transform_9(%arg0: i32) -> (i32, i32) {
    %c0_i32 = arith.constant 0 : i32
    %c0_i32_0 = arith.constant 0 : i32
    %c0_i32_1 = arith.constant 0 : i32
    return %c0_i32, %c0_i32_0 : i32, i32
  }
  func.func @transform_10(%arg0: i32) -> (i32, i32) {
    %c0_i32 = arith.constant 0 : i32
    %c0_i32_0 = arith.constant 0 : i32
    %c0_i32_1 = arith.constant 0 : i32
    return %c0_i32, %c0_i32_0 : i32, i32
  }
  func.func @transform_11(%arg0: i32) -> (i32, i32) {
    %c0_i32 = arith.constant 0 : i32
    %c0_i32_0 = arith.constant 0 : i32
    %c0_i32_1 = arith.constant 0 : i32
    return %c0_i32, %c0_i32_0 : i32, i32
  }
  func.func @transform_12(%arg0: i32) -> (i32, i32) {
    %c0_i32 = arith.constant 0 : i32
    %c0_i32_0 = arith.constant 0 : i32
    %c0_i32_1 = arith.constant 0 : i32
    return %c0_i32, %c0_i32_0 : i32, i32
  }
  func.func @transform_13(%arg0: i32) -> (i32, i32, i32, i32) {
    %c0_i32 = arith.constant 0 : i32
    %c0_i32_0 = arith.constant 0 : i32
    %c0_i32_1 = arith.constant 0 : i32
    %c0_i32_2 = arith.constant 0 : i32
    %c0_i32_3 = arith.constant 0 : i32
    return %c0_i32, %c0_i32_0, %c0_i32_1, %c0_i32_2 : i32, i32, i32, i32
  }
}

</mosaic_0001>

<bundles_post_ra>
// kernel: tpu_custom_call.1
= control target key start
LH: loop header
LB: loop body
LE: loop exit
PB: predicated region body
PF: predicated region fallthrough
CT: control target
= control target key end

     0   :  { %18 = vsyncpa [#allocation3], 0  ;;  %s5275_s0 = inlined_call_operand.hbm [shape: f32[2,8,8,128], index: 0, kind: input, shape index: {}]   ;;  %s5276_s1 = inlined_call_operand.hbm [shape: bf16[128,128], index: 1, kind: input, shape index: {}]   ;;  %s5277_s2 = inlined_call_operand.vmem [shape: f32[1,128], index: 2, kind: input, shape index: {}]   ;;  %s5278_s3 = inlined_call_operand.vmem [shape: f32[1,128], index: 3, kind: input, shape index: {}]   ;;  %s5279_s4 = inlined_call_operand.hbm [shape: bf16[1152,128], index: 4, kind: input, shape index: {}]   ;;  %s5280_s5 = inlined_call_operand.vmem [shape: f32[1,128], index: 5, kind: input, shape index: {}]   ;;  %s5281_s6 = inlined_call_operand.vmem [shape: f32[1,128], index: 6, kind: input, shape index: {}]   ;;  %s5282_s7 = inlined_call_operand.hbm [shape: bf16[128,128], index: 7, kind: input, shape index: {}]   ;;  %s5283_s8 = inlined_call_operand.vmem [shape: f32[1,128], index: 8, kind: input, shape index: {}]   ;;  %s5284_s9 = inlined_call_operand.vmem [shape: f32[1,128], index: 9, kind: input, shape index: {}]   ;;  %s5285_s10 = inlined_call_operand.hbm [shape: bf16[128,128], index: 10, kind: input, shape index: {}]   ;;  %s5286_s11 = inlined_call_operand.vmem [shape: f32[1,128], index: 11, kind: input, shape index: {}]   ;;  %s5287_s12 = inlined_call_operand.vmem [shape: f32[1,128], index: 12, kind: input, shape index: {}]   ;;  %s5288_s13 = inlined_call_operand.hbm [shape: f32[2,8,8,128], index: 13, kind: output, shape index: {}]  }
   0x1   :  { %19 = vsyncpa [#allocation6], 0 }
   0x2   :  { %20 = vsyncpa [#allocation9], 0 }
   0x3   :  { %21 = vsyncpa [#allocation4], 0  ;;  %s3944_s25 = smov [#allocation5]   ;;  %s3804_s29 = scalar_lea.hbm %s5276_s1, 1024 }
   0x4   :  { %s39_s26 = sshll.u32 %s3944_s25, 4  ;;  %p3805_p0 = scmp.ne.s32.totalorder %s5276_s1, %s3804_s29  ;;  %s40_s26 = int_to_ptr.vmem [resolvable:$true] %s39_s26 }
   0x5   :  { %p3808_p1 = scmp.lt.u32.totalorder %s3804_s29, %s5276_s1 }
   0x7   :  { %p3810_p2 = pnand %p3808_p1, %p3805_p0 }
   0x9   :  { %3813 = shalt.err (!%p3810_p2)
}
   0xa   :  { %s3814_s17 = scalar_lea.vmem %s40_s26, 1024  ;;  %p3819_p4 = scmp.lt.s32.totalorder %s40_s26, %s40_s26 }
   0xb   :  { %p3815_p3 = scmp.ne.s32.totalorder %s40_s26, %s3814_s17  ;;  %p3820_p5 = scmp.lt.s32.totalorder %s3814_s17, %s3814_s17 }
   0xd   :  { %p3821_p6 = por %p3820_p5, %p3819_p4 }
   0xf   :  { %p3822_p7 = pnand %p3821_p6, %p3815_p3 }
  0x11   :  { %3825 = shalt.err (!%p3822_p7)
}
  0x12   :  { %s3945_s18 = smov 64   ;;  %s3946_s19 = smov 4  }
  0x13   :  { %45 = dma.hbm_to_vmem [thread:$0]  %s5276_s1, 1024, %s40_s26, [#allocation6], %s3945_s18, %s3945_s18, %s3946_s19  }
  0x14   :  { %s3947_s22 = smov [#allocation8]   ;;  %s3948_s24 = smov [#allocation2]  }
  0x15   :  { %s71_s23 = sshll.u32 %s3947_s22, 4  ;;  %s27_s25 = sshll.u32 %s3948_s24, 4  ;;  %s72_s23 = int_to_ptr.vmem [resolvable:$true] %s71_s23  ;;  %s28_s25 = int_to_ptr.vmem [resolvable:$true] %s27_s25 }
  0x16   :  { %s3826_s29 = scalar_lea.hbm %s5282_s7, 1024 }
  0x17   :  { %p3827_p8 = scmp.ne.s32.totalorder %s5282_s7, %s3826_s29  ;;  %p3830_p9 = scmp.lt.u32.totalorder %s3826_s29, %s5282_s7 }
  0x19   :  { %p3832_p10 = pnand %p3830_p9, %p3827_p8 }
  0x1b   :  { %3835 = shalt.err (!%p3832_p10)
}
  0x1c   :  { %s3836_s1 = scalar_lea.vmem %s72_s23, 1024  ;;  %p3841_p12 = scmp.lt.s32.totalorder %s72_s23, %s72_s23 }
  0x1d   :  { %p3837_p11 = scmp.ne.s32.totalorder %s72_s23, %s3836_s1  ;;  %p3842_p13 = scmp.lt.s32.totalorder %s3836_s1, %s3836_s1 }
  0x1f   :  { %p3843_p0 = por %p3842_p13, %p3841_p12 }
  0x21   :  { %p3844_p1 = pnand %p3843_p0, %p3837_p11 }
  0x23   :  { %3847 = shalt.err (!%p3844_p1)
}
  0x24   :  { %77 = dma.hbm_to_vmem [thread:$0]  %s5282_s7, 1024, %s72_s23, [#allocation9], %s3945_s18, %s3945_s18, %s3946_s19  }
  0x25   :  { %s3848_s22 = scalar_lea.hbm %s5275_s0, 2048 }
  0x26   :  { %p3849_p2 = scmp.ne.s32.totalorder %s5275_s0, %s3848_s22  ;;  %p3852_p3 = scmp.lt.u32.totalorder %s3848_s22, %s5275_s0 }
  0x28   :  { %p3854_p4 = pnand %p3852_p3, %p3849_p2 }
  0x2a   :  { %3857 = shalt.err (!%p3854_p4)
}
  0x2b   :  { %s3858_s30 = scalar_lea.vmem %s28_s25, 2048  ;;  %p3863_p6 = scmp.lt.s32.totalorder %s28_s25, %s28_s25 }
  0x2c   :  { %p3859_p5 = scmp.ne.s32.totalorder %s28_s25, %s3858_s30  ;;  %p3864_p7 = scmp.lt.s32.totalorder %s3858_s30, %s3858_s30 }
  0x2e   :  { %p3865_p8 = por %p3864_p7, %p3863_p6 }
  0x30   :  { %p3866_p9 = pnand %p3865_p8, %p3859_p5 }
  0x32   :  { %3869 = shalt.err (!%p3866_p9)
}
  0x33   :  { %s3949_s7 = smov 128   ;;  %s3950_s23 = smov 8  }
  0x34   :  { %33 = dma.hbm_to_vmem [thread:$0]  %s5275_s0, 2048, %s28_s25, [#allocation3], %s3949_s7, %s3949_s7, %s3950_s23  }
  0x35   :  { %s3951_s16 = smov [#allocation7]   ;;  %s3952_s26 = smov [#allocation10]  }
  0x36   :  { %s55_s1 = sshll.u32 %s3951_s16, 4  ;;  %s87_s17 = sshll.u32 %s3952_s26, 4  ;;  %s56_s1 = int_to_ptr.vmem [resolvable:$true] %s55_s1  ;;  %s88_s17 = int_to_ptr.vmem [resolvable:$true] %s87_s17 }
  0x37   :  { %s3870_s22 = scalar_lea.hbm %s5279_s4, 9216 }
  0x38   :  { %p3871_p10 = scmp.ne.s32.totalorder %s5279_s4, %s3870_s22  ;;  %p3874_p11 = scmp.lt.u32.totalorder %s3870_s22, %s5279_s4 }
  0x3a   :  { %p3876_p12 = pnand %p3874_p11, %p3871_p10 }
  0x3c   :  { %3879 = shalt.err (!%p3876_p12)
}
  0x3d   :  { %s3880_s0 = scalar_lea.vmem %s56_s1, 9216  ;;  %p3885_p0 = scmp.lt.s32.totalorder %s56_s1, %s56_s1 }
  0x3e   :  { %p3881_p13 = scmp.ne.s32.totalorder %s56_s1, %s3880_s0  ;;  %p3886_p1 = scmp.lt.s32.totalorder %s3880_s0, %s3880_s0 }
  0x40   :  { %p3887_p2 = por %p3886_p1, %p3885_p0 }
  0x42   :  { %p3888_p3 = pnand %p3887_p2, %p3881_p13 }
  0x44   :  { %3891 = shalt.err (!%p3888_p3)
}
  0x45   :  { %61 = dma.hbm_to_vmem [thread:$0]  %s5279_s4, 9216, %s56_s1, [#allocation6], %s3945_s18, %s3945_s18, %s3946_s19  }
  0x46   :  { %s3892_s16 = scalar_lea.hbm %s5285_s10, 1024 }
  0x47   :  { %p3893_p4 = scmp.ne.s32.totalorder %s5285_s10, %s3892_s16  ;;  %p3896_p5 = scmp.lt.u32.totalorder %s3892_s16, %s5285_s10 }
  0x49   :  { %p3898_p6 = pnand %p3896_p5, %p3893_p4 }
  0x4b   :  { %3901 = shalt.err (!%p3898_p6)
}
  0x4c   :  { %s3902_s24 = scalar_lea.vmem %s88_s17, 1024  ;;  %p3907_p8 = scmp.lt.s32.totalorder %s88_s17, %s88_s17 }
  0x4d   :  { %p3903_p7 = scmp.ne.s32.totalorder %s88_s17, %s3902_s24  ;;  %p3908_p9 = scmp.lt.s32.totalorder %s3902_s24, %s3902_s24 }
  0x4f   :  { %p3909_p10 = por %p3908_p9, %p3907_p8 }
  0x51   :  { %p3910_p11 = pnand %p3909_p10, %p3903_p7 }
  0x53   :  { %3913 = shalt.err (!%p3910_p11)
}
  0x54   :  { %93 = dma.hbm_to_vmem [thread:$0]  %s5285_s10, 1024, %s88_s17, [#allocation9], %s3945_s18, %s3945_s18, %s3946_s19  }
  0x55   :  { %3936 = dma.done.wait [#allocation3], 2048  }
  0x56   :  { %3937 = vsyncadd [#allocation3], 4294965248 }
  0x57   :  { %3938 = dma.done.wait [#allocation6], 10240  }
  0x58   :  { %3939 = vsyncadd [#allocation6], 4294957056 }
  0x59   :  { %3940 = dma.done.wait [#allocation9], 2048  }
  0x5a   :  { %3941 = vsyncadd [#allocation9], 4294965248  ;;  %v3700_v0 = vld [vmem:[#allocation5] sm:$0xff]   ;;  %v3701_v1 = vld [vmem:[#allocation5 + $0x8] sm:$0xff]   ;;  %vm613_vm0 = vcmask 1040384   ;;  %vm633_vm3 = vcmask 1044480  }
  0x5b   :  { %3561 = vmatprep.subr.bf16.mxu0 %v3700_v0  ;;  %v3702_v2 = vld [vmem:[#allocation5 + $0x10] sm:$0xff]   ;;  %v3703_v3 = vld [vmem:[#allocation5 + $0x18] sm:$0xff]   ;;  %v114_v4 = vld [vmem:[#allocation2] sm:$0xff]  ;;  %vm614_vm1 = vsmask.f32 256  ;;  %vm941_vm6 = vcmask 1042432  }
  0x5c   :  { %3562 = vmatpush3.bf16.msra.mxu0 %v3700_v0  ;;  %v115_v5 = vld [vmem:[#allocation2 + $0x8] sm:$0xff]  ;;  %v3704_v7 = vld [vmem:[#allocation5 + $0x20] sm:$0xff]   ;;  %v3706_v9 = vld [vmem:[#allocation5 + $0x30] sm:$0xff]   ;;  %vm634_vm4 = vsmask.f32 4352  ;;  %vm942_vm7 = vcmask 1046532  }
  0x5d   :  { %3563 = vmatprep.subr.bf16.mxu0 %v3701_v1  ;;  %v4100_v6 = vpack.c.bf16 %v115_v5, %v114_v4  ;;  %v3705_v8 = vld [vmem:[#allocation5 + $0x28] sm:$0xff]   ;;  %v3707_v10 = vld [vmem:[#allocation5 + $0x38] sm:$0xff]   ;;  %v116_v11 = vld [vmem:[#allocation2 + $0x10] sm:$0xff]  ;;  %vm728_vm9 = vsmask.f32 3328 }
  0x5e   :  { %v117_v12 = vld [vmem:[#allocation2 + $0x18] sm:$0xff]  ;;  %v118_v13 = vld [vmem:[#allocation2 + $0x20] sm:$0xff]  ;;  %v119_v14 = vld [vmem:[#allocation2 + $0x28] sm:$0xff]  ;;  %vm729_vm10 = vsmask.f32 7440 }
  0x5f   :  { %5313 = vst [vmem:[#allocation16_spill] sm:$0xff] %v4100_v6  ;;  %3577 = vmatprep.mubr.bf16.mxu0 %v4100_v6  ;;  %v4103_v15 = vpack.c.bf16 %v117_v12, %v116_v11  ;;  %v4105_v16 = vpack.c.bf16 %v119_v14, %v118_v13  ;;  %v120_v17 = vld [vmem:[#allocation2 + $0x30] sm:$0xff]  ;;  %v121_v18 = vld [vmem:[#allocation2 + $0x38] sm:$0xff]  ;;  %v122_v19 = vld [vmem:[#allocation2 + $0x40] sm:$0xff] }
  0x60   :  { %3564 = vmatpush3.bf16.msra.mxu0 %v3701_v1  ;;  %v123_v20 = vld [vmem:[#allocation2 + $0x48] sm:$0xff]  ;;  %v4109_v21 = vpack.c.bf16 %v121_v18, %v120_v17  ;;  %v124_v23 = vld [vmem:[#allocation2 + $0x50] sm:$0xff]  ;;  %v125_v24 = vld [vmem:[#allocation2 + $0x58] sm:$0xff] }
  0x61   :  { %3565 = vmatprep.subr.bf16.mxu0 %v3702_v2  ;;  %5314 = vst [vmem:[#allocation17_spill] sm:$0xff] %v4103_v15  ;;  %5315 = vst [vmem:[#allocation18_spill] sm:$0xff] %v4105_v16  ;;  %v4111_v22 = vpack.c.bf16 %v123_v20, %v122_v19  ;;  %v126_v25 = vld [vmem:[#allocation2 + $0x60] sm:$0xff]  ;;  %v127_v26 = vld [vmem:[#allocation2 + $0x68] sm:$0xff]  ;;  %v4115_v27 = vpack.c.bf16 %v125_v24, %v124_v23 }
  0x62   :  { %5316 = vst [vmem:[#allocation19_spill] sm:$0xff] %v4109_v21  ;;  %v4117_v28 = vpack.c.bf16 %v127_v26, %v126_v25  ;;  %v128_v29 = vld [vmem:[#allocation2 + $0x70] sm:$0xff]  ;;  %v129_v30 = vld [vmem:[#allocation2 + $0x78] sm:$0xff]  ;;  %v3708_v32 = vld [vmem:[#allocation7 + $0xc0] sm:$0xff]  }
  0x63   :  { %5317 = vst [vmem:[#allocation20_spill] sm:$0xff] %v4111_v22  ;;  %5318 = vst [vmem:[#allocation21_spill] sm:$0xff] %v4115_v27  ;;  %v4121_v31 = vpack.c.bf16 %v129_v30, %v128_v29  ;;  %v3709_v33 = vld [vmem:[#allocation7 + $0x80] sm:$0xff]   ;;  %v3710_v34 = vld [vmem:[#allocation7 + $0xc8] sm:$0xff]  }
  0x64   :  { %3566 = vmatpush3.bf16.msra.mxu0 %v3702_v2  ;;  %5319 = vst [vmem:[#allocation22_spill] sm:$0xff] %v4117_v28  ;;  %v3711_v35 = vld [vmem:[#allocation7 + $0x88] sm:$0xff]   ;;  %v3712_v36 = vld [vmem:[#allocation7 + $0x40] sm:$0xff]   ;;  %v3714_v38 = vld [vmem:[#allocation7 + $0xd0] sm:$0xff]  }
  0x65   :  { %3567 = vmatprep.subr.bf16.mxu0 %v3703_v3  ;;  %5320 = vst [vmem:[#allocation23_spill] sm:$0xff] %v4121_v31  ;;  %v3713_v37 = vld [vmem:[#allocation7] sm:$0xff]   ;;  %3257 = vmatprep.subr.bf16.mxu1 %v3712_v36  ;;  %v3715_v39 = vld [vmem:[#allocation7 + $0x90] sm:$0xff]   ;;  %v3716_v40 = vld [vmem:[#allocation7 + $0x48] sm:$0xff]  }
  0x66   :  { %3258 = vmatpush3.bf16.msra.mxu1 %v3713_v37  ;;  %v3717_v41 = vld [vmem:[#allocation7 + $0x8] sm:$0xff]   ;;  %v3718_v42 = vld [vmem:[#allocation7 + $0xd8] sm:$0xff]   ;;  %v3720_v44 = vld [vmem:[#allocation7 + $0x50] sm:$0xff]  }
  0x67   :  { %3259 = vmatprep.subr.bf16.mxu1 %v3716_v40  ;;  %v3719_v43 = vld [vmem:[#allocation7 + $0x98] sm:$0xff]   ;;  %v3721_v45 = vld [vmem:[#allocation7 + $0x10] sm:$0xff]   ;;  %v3722_v46 = vld [vmem:[#allocation7 + $0xe0] sm:$0xff]  }
  0x68   :  { %3568 = vmatpush3.bf16.msra.mxu0 %v3703_v3  ;;  %v3723_v47 = vld [vmem:[#allocation7 + $0xa0] sm:$0xff]   ;;  %v3724_v48 = vld [vmem:[#allocation7 + $0x58] sm:$0xff]   ;;  %v3726_v50 = vld [vmem:[#allocation7 + $0xe8] sm:$0xff]  }
  0x69   :  { %3569 = vmatprep.subr.bf16.mxu0 %v3704_v7  ;;  %v3725_v49 = vld [vmem:[#allocation7 + $0x18] sm:$0xff]   ;;  %v3727_v51 = vld [vmem:[#allocation7 + $0xa8] sm:$0xff]   ;;  %v3728_v52 = vld [vmem:[#allocation7 + $0x60] sm:$0xff]  }
  0x6a   :  { %3260 = vmatpush3.bf16.msra.mxu1 %v3717_v41  ;;  %v3729_v53 = vld [vmem:[#allocation7 + $0x20] sm:$0xff]   ;;  %v3730_v54 = vld [vmem:[#allocation7 + $0xf0] sm:$0xff]   ;;  %v3732_v56 = vld [vmem:[#allocation7 + $0x68] sm:$0xff]  }
  0x6b   :  { %3261 = vmatprep.subr.bf16.mxu1 %v3720_v44  ;;  %v3731_v55 = vld [vmem:[#allocation7 + $0xb0] sm:$0xff]   ;;  %v3733_v57 = vld [vmem:[#allocation7 + $0x28] sm:$0xff]   ;;  %v3734_v58 = vld [vmem:[#allocation7 + $0xf8] sm:$0xff]  }
  0x6c   :  { %3570 = vmatpush3.bf16.msra.mxu0 %v3704_v7  ;;  %v3735_v59 = vld [vmem:[#allocation7 + $0xb8] sm:$0xff]   ;;  %v3736_v60 = vld [vmem:[#allocation7 + $0x70] sm:$0xff]   ;;  %v3740_v0 = vld [vmem:[#allocation7 + $0x140] sm:$0xff]  }
  0x6d   :  { %3571 = vmatprep.subr.bf16.mxu0 %v3705_v8  ;;  %v3737_v61 = vld [vmem:[#allocation7 + $0x30] sm:$0xff]   ;;  %v3738_v62 = vld [vmem:[#allocation7 + $0x78] sm:$0xff]   ;;  %v3748_v40 = vld [vmem:[#allocation7 + $0x1c0] sm:$0xff]  }
  0x6e   :  { %3262 = vmatpush3.bf16.msra.mxu1 %v3721_v45  ;;  %v3739_v63 = vld [vmem:[#allocation7 + $0x38] sm:$0xff]   ;;  %vm4204_vm2 = vmand %vm613_vm0, %vm614_vm1 }
  0x6f   :  { %3263 = vmatprep.subr.bf16.mxu1 %v3724_v48  ;;  %vm4208_vm5 = vmand %vm633_vm3, %vm634_vm4 }
  0x70   :  { %3572 = vmatpush3.bf16.msra.mxu0 %v3705_v8  ;;  %vm4227_vm8 = vmor %vm941_vm6, %vm942_vm7 }
  0x71   :  { %3573 = vmatprep.subr.bf16.mxu0 %v3706_v9  ;;  %vm4288_vm11 = vmor %vm728_vm9, %vm729_vm10 }
  0x72   :  { %3264 = vmatpush3.bf16.msra.mxu1 %v3725_v49 }
  0x73   :  { %3265 = vmatprep.subr.bf16.mxu1 %v3728_v52 }
  0x74   :  { %3574 = vmatpush3.bf16.msra.mxu0 %v3706_v9 }
  0x75   :  { %3575 = vmatprep.subr.bf16.mxu0 %v3707_v10 }
  0x76   :  { %3266 = vmatpush3.bf16.msra.mxu1 %v3729_v53 }
  0x77   :  { %3267 = vmatprep.subr.bf16.mxu1 %v3732_v56 }
  0x78   :  { %3576 = vmatpush3.bf16.msra.mxu0 %v3707_v10 }
  0x79   :  { %3321 = vmatprep.subr.bf16.mxu0 %v3708_v32 }
  0x7a   :  { %3268 = vmatpush3.bf16.msra.mxu1 %v3733_v57 }
  0x7b   :  { %3578 = vmatmul.mubr.bf16.vlgmr.msra.gmra.mrb[0].mxu0 %v4103_v15  ;;  %3269 = vmatprep.subr.bf16.mxu1 %v3736_v60 }
  0x7c   :  { %3581 = vmatprep.mubr.bf16.mxu0 %v4105_v16  ;;  %3322 = vmatpush3.bf16.msra.mxu0 %v3709_v33 }
  0x7d   :  { %3323 = vmatprep.subr.bf16.mxu0 %v3710_v34 }
  0x7e   :  { %3270 = vmatpush3.bf16.msra.mxu1 %v3737_v61 }
  0x7f   :  { %3271 = vmatprep.subr.bf16.mxu1 %v3738_v62 }
  0x80   :  { %3324 = vmatpush3.bf16.msra.mxu0 %v3711_v35 }
  0x81   :  { %3325 = vmatprep.subr.bf16.mxu0 %v3714_v38 }
  0x82   :  { %3272 = vmatpush3.bf16.msra.mxu1 %v3739_v63 }
  0x83   :  { %3582 = vmatmul.mubr.bf16.gmra.mrb[4].mxu0 %v4109_v21  ;;  %3385 = vmatprep.subr.bf16.mxu1 %v3740_v0 }
  0x84   :  { %3585 = vmatprep.mubr.bf16.mxu0 %v4111_v22  ;;  %3326 = vmatpush3.bf16.msra.mxu0 %v3715_v39  ;;  %v3761_v22 = vld [vmem:[#allocation7 + $0x1a0] sm:$0xff]  }
  0x85   :  { %3327 = vmatprep.subr.bf16.mxu0 %v3718_v42 }
  0x88   :  { %3328 = vmatpush3.bf16.msra.mxu0 %v3719_v43 }
  0x89   :  { %3329 = vmatprep.subr.bf16.mxu0 %v3722_v46 }
  0x8b   :  { %3586 = vmatmul.mubr.bf16.gmra.mrb[8].mxu0 %v4115_v27 }
  0x8c   :  { %3589 = vmatprep.mubr.bf16.mxu0 %v4117_v28  ;;  %3330 = vmatpush3.bf16.msra.mxu0 %v3723_v47 }
  0x8d   :  { %3331 = vmatprep.subr.bf16.mxu0 %v3726_v50 }
  0x90   :  { %3332 = vmatpush3.bf16.msra.mxu0 %v3727_v51 }
  0x91   :  { %3333 = vmatprep.subr.bf16.mxu0 %v3730_v54 }
  0x93   :  { %3590 = vmatmul.mubr.bf16.gmra.mrb[12].mxu0 %v4121_v31 }
  0x94   :  { %3334 = vmatpush3.bf16.msra.mxu0 %v3731_v55 }
  0x95   :  { %3335 = vmatprep.subr.bf16.mxu0 %v3734_v58 }
  0x98   :  { %3336 = vmatpush3.bf16.msra.mxu0 %v3735_v59 }
  0x99   :  { %3449 = vmatprep.subr.bf16.mxu0 %v3748_v40 }
 0x14e   :  { %v4124_v1 = vpop.f32.mrb[0].mxu0 }
 0x14f   :  { %v4126_v2 = vpop.f32.mrb[1].mxu0  ;;  %v324_v9 = vmul.f32 %v4124_v1, %v4124_v1 }
 0x150   :  { %v4128_v3 = vpop.f32.mrb[2].mxu0  ;;  %v322_v5 = vmul.f32 %v4126_v2, %v4126_v2 }
 0x151   :  { %v4130_v4 = vpop.f32.mrb[3].mxu0  ;;  %v325_v12 = vmul.f32 %v4128_v3, %v4128_v3 }
 0x152   :  { %v301_v7 = vadd.f32 %v4130_v4, %v4126_v2  ;;  %v323_v8 = vmul.f32 %v4130_v4, %v4130_v4 }
 0x154   :  { %v302_v10 = vadd.f32 %v4124_v1, %v301_v7  ;;  %v338_v11 = vadd.f32 %v323_v8, %v322_v5 }
 0x156   :  { %v339_v13 = vadd.f32 %v338_v11, %v324_v9  ;;  %v4143_v14 = vpop.f32.mrb[4].mxu0  ;;  %v303_v17 = vadd.f32 %v4128_v3, %v302_v10 }
 0x157   :  { %v4146_v18 = vpop.f32.mrb[5].mxu0  ;;  %v328_v32 = vmul.f32 %v4143_v14, %v4143_v14 }
 0x158   :  { %v304_v19 = vadd.f32 %v303_v17, %v4146_v18  ;;  %v326_v20 = vmul.f32 %v4146_v18, %v4146_v18  ;;  %v340_v23 = vadd.f32 %v339_v13, %v325_v12  ;;  %v4151_v24 = vpop.f32.mrb[6].mxu0 }
 0x159   :  { %v4153_v25 = vpop.f32.mrb[7].mxu0  ;;  %v329_v35 = vmul.f32 %v4151_v24, %v4151_v24 }
 0x15a   :  { %v341_v26 = vadd.f32 %v340_v23, %v326_v20  ;;  %v305_v29 = vadd.f32 %v304_v19, %v4153_v25  ;;  %v327_v30 = vmul.f32 %v4153_v25, %v4153_v25 }
 0x15c   :  { %v306_v33 = vadd.f32 %v4143_v14, %v305_v29  ;;  %v342_v34 = vadd.f32 %v341_v26, %v327_v30 }
 0x15e   :  { %v343_v36 = vadd.f32 %v342_v34, %v328_v32  ;;  %v4163_v37 = vpop.f32.mrb[8].mxu0  ;;  %v307_v38 = vadd.f32 %v4151_v24, %v306_v33 }
 0x15f   :  { %v4166_v39 = vpop.f32.mrb[9].mxu0  ;;  %v332_v49 = vmul.f32 %v4163_v37, %v4163_v37 }
 0x160   :  { %v308_v41 = vadd.f32 %v307_v38, %v4166_v39  ;;  %v330_v42 = vmul.f32 %v4166_v39, %v4166_v39  ;;  %v344_v43 = vadd.f32 %v343_v36, %v329_v35  ;;  %v4171_v44 = vpop.f32.mrb[10].mxu0  ;;  %v3953_v35 = vmov 0  }
 0x161   :  { %v4173_v45 = vpop.f32.mrb[11].mxu0  ;;  %v333_v52 = vmul.f32 %v4171_v44, %v4171_v44  ;;  %v480_v36 = vrot.slane %v3953_v35, 7 }
 0x162   :  { %v345_v46 = vadd.f32 %v344_v43, %v330_v42  ;;  %v309_v47 = vadd.f32 %v308_v41, %v4173_v45  ;;  %v331_v48 = vmul.f32 %v4173_v45, %v4173_v45 }
 0x164   :  { %v310_v50 = vadd.f32 %v4163_v37, %v309_v47  ;;  %v346_v51 = vadd.f32 %v345_v46, %v331_v48  ;;  %v616_v47 = vsel %vm4204_vm2, 0, %v480_v36 }
 0x166   :  { %v347_v53 = vadd.f32 %v346_v51, %v332_v49  ;;  %v4183_v54 = vpop.f32.mrb[12].mxu0  ;;  %v311_v55 = vadd.f32 %v4171_v44, %v310_v50  ;;  %v4216_v49 = vsel %vm4208_vm5, %v616_v47, 0 }
 0x167   :  { %v4186_v56 = vpop.f32.mrb[13].mxu0  ;;  %v336_v5 = vmul.f32 %v4183_v54, %v4183_v54  ;;  %5325 = vst [vmem:[#allocation24_spill] sm:$0xff] %v4216_v49 }
 0x168   :  { %v312_v57 = vadd.f32 %v311_v55, %v4186_v56  ;;  %v334_v58 = vmul.f32 %v4186_v56, %v4186_v56  ;;  %v348_v59 = vadd.f32 %v347_v53, %v333_v52  ;;  %v4191_v60 = vpop.f32.mrb[14].mxu0  ;;  %v3032_v52 = vcombine.low %v4216_v49, %v4216_v49 }
 0x169   :  { %v4193_v61 = vpop.f32.mrb[15].mxu0  ;;  %v337_v9 = vmul.f32 %v4191_v60, %v4191_v60  ;;  %v370_v53 = vlaneseq }
 0x16a   :  { %v349_v62 = vadd.f32 %v348_v59, %v334_v58  ;;  %v313_v63 = vadd.f32 %v312_v57, %v4193_v61  ;;  %v335_v0 = vmul.f32 %v4193_v61, %v4193_v61  ;;  %v732_v55 = vshrl.u32 %v3032_v52, 16 }
 0x16b   :  { %v735_v57 = vshll.u32 %v3032_v52, 16  ;;  %v371_v58 = vshrl.u32 %v370_v53, 7  ;;  %v3033_v59 = vcombine.high %v4216_v49, %v4216_v49 }
 0x16c   :  { %v314_v7 = vadd.f32 %v4183_v54, %v313_v63  ;;  %v350_v8 = vadd.f32 %v349_v62, %v335_v0  ;;  %v734_v62 = vrot.slane %v732_v55, 4  ;;  %v299_v0 = vld [vmem:[%s5277_s2] sm:$0x1] }
 0x16d   :  { %v737_v63 = vrot.slane %v735_v57, 5 }
 0x16e   :  { %v315_v10 = vadd.f32 %v4191_v60, %v314_v7  ;;  %v351_v11 = vadd.f32 %v350_v8, %v336_v5  ;;  %v4225_v5 = vsub.s32 0, %v371_v58  ;;  %v3062_v7 = vrot.slane %v3032_v52, 9 }
 0x16f   :  { %v946_v8 = vrot.slane %v3033_v59, 5 }
 0x170   :  { %v316_v12 = vrot.slane %v315_v10, 4  ;;  %v352_v13 = vadd.f32 %v351_v11, %v337_v9  ;;  %5326 = vst [vmem:[#allocation25_spill] sm:$0xff] %v4225_v5  ;;  %v738_v11 = vor.u32 %v737_v63, %v734_v62 }
 0x172   :  { %v317_v17 = vadd.f32 %v316_v12, %v315_v10  ;;  %v353_v19 = vrot.slane %v352_v13, 4  ;;  %v741_v12 = vshll.u32 %v3033_v59, 16 }
 0x174   :  { %v318_v20 = vrot.slane %v317_v17, 2  ;;  %v354_v23 = vadd.f32 %v353_v19, %v352_v13 }
 0x176   :  { %v319_v26 = vadd.f32 %v318_v20, %v317_v17  ;;  %v355_v29 = vrot.slane %v354_v23, 2  ;;  %v300_v17 = vld [vmem:[%s5278_s3] sm:$0x1] }
 0x178   :  { %v320_v30 = vrot.slane %v319_v26, 1  ;;  %v356_v32 = vadd.f32 %v355_v29, %v354_v23  ;;  %v4239_v23 = vsel %vm4227_vm8, %v3062_v7, %v946_v8  ;;  %v743_v29 = vrot.slane %v741_v12, 5 }
 0x179   :  { %5329 = vst [vmem:[#allocation26_spill] sm:$0xff] %v4239_v23 }
 0x17a   :  { %v321_v33 = vadd.f32 %v320_v30, %v319_v26  ;;  %v357_v34 = vrot.slane %v356_v32, 1  ;;  %v739_v26 = vrot.slane %v738_v11, 4 }
 0x17c   :  { %v358_v40 = vadd.f32 %v357_v34, %v356_v32  ;;  %v359_v41 = vmul.f32 0.0078125, %v321_v33  ;;  %v4300_v55 = vsel %vm4288_vm11, %v739_v26, %v743_v29 }
 0x17d   :  { %5332 = vst [vmem:[#allocation27_spill] sm:$0xff] %v4300_v55 }
 0x17e   :  { %v360_v42 = vmul.f32 0.0078125, %v358_v40  ;;  %v361_v43 = vmul.f32 %v359_v41, %v359_v41 }
 0x180   :  { %v362_v48 = vsub.f32 %v360_v42, %v361_v43 }
 0x182   :  { %v363_v50 = vmax.f32 %v362_v48, 0.0 }
 0x184   :  { %v364_v51 = vadd.f32 1e-05, %v363_v50 }
 0x186   :  { %3796 = vrsqrt.f32 %v364_v51 }
 0x190   :  { %v3797_v9 = vpop.eup %3796 }
 0x191   :  { %v366_v13 = vmul.f32 %v3797_v9, %v299_v0 }
 0x193   :  { %v367_v19 = vmul.f32 %v366_v13, %v359_v41  ;;  %v4235_v20 = vrot.slane %v366_v13, %v4225_v5 }
 0x195   :  { %v368_v30 = vsub.f32 %v300_v17, %v367_v19  ;;  %v388_v32 = vmul.f32 %v4235_v20, %v4193_v61  ;;  %v375_v33 = vmul.f32 %v4235_v20, %v4126_v2  ;;  %v376_v34 = vmul.f32 %v4235_v20, %v4130_v4 }
 0x196   :  { %v377_v35 = vmul.f32 %v4124_v1, %v4235_v20  ;;  %v378_v36 = vmul.f32 %v4128_v3, %v4235_v20  ;;  %v379_v40 = vmul.f32 %v4235_v20, %v4146_v18  ;;  %v380_v41 = vmul.f32 %v4235_v20, %v4153_v25 }
 0x197   :  { %v4256_v61 = vrot.slane %v368_v30, %v4225_v5  ;;  %v381_v2 = vmul.f32 %v4143_v14, %v4235_v20  ;;  %v382_v4 = vmul.f32 %v4151_v24, %v4235_v20  ;;  %v4264_v1 = vmul.f32 %v4235_v20, %v4166_v39 }
 0x198   :  { %v4268_v3 = vmul.f32 %v4235_v20, %v4173_v45  ;;  %v4272_v18 = vmul.f32 %v4163_v37, %v4235_v20  ;;  %v4276_v25 = vmul.f32 %v4171_v44, %v4235_v20  ;;  %v4280_v14 = vmul.f32 %v4235_v20, %v4186_v56  ;;  %v3775_v37 = vld [vmem:[#allocation7 + $0x218] sm:$0xff]  }
 0x199   :  { %v410_v24 = vadd.f32 %v4256_v61, %v388_v32  ;;  %v397_v39 = vadd.f32 %v4256_v61, %v375_v33  ;;  %v398_v42 = vadd.f32 %v4256_v61, %v376_v34  ;;  %v399_v45 = vadd.f32 %v4256_v61, %v377_v35 }
 0x19a   :  { %v400_v44 = vadd.f32 %v4256_v61, %v378_v36  ;;  %v401_v43 = vadd.f32 %v4256_v61, %v379_v40  ;;  %v402_v56 = vadd.f32 %v4256_v61, %v380_v41  ;;  %v4296_v47 = vadd.f32 %v4256_v61, %v381_v2 }
 0x19b   :  { %v426_v48 = vmax.f32 %v410_v24, 0.0  ;;  %v413_v50 = vmax.f32 %v397_v39, 0.0  ;;  %v414_v51 = vmax.f32 %v398_v42, 0.0  ;;  %v415_v52 = vmax.f32 %v399_v45, 0.0 }
 0x19c   :  { %v416_v53 = vmax.f32 %v400_v44, 0.0  ;;  %v417_v57 = vmax.f32 %v401_v43, 0.0  ;;  %v418_v58 = vmax.f32 %v402_v56, 0.0  ;;  %v4307_v11 = vadd.f32 %v4256_v61, %v382_v4 }
 0x19d   :  { %v4302_v59 = vpack.c.bf16 %v426_v48, %v426_v48  ;;  %v3225_v62 = vpack.c.bf16 %v413_v50, %v413_v50  ;;  %v3226_v63 = vpack.c.bf16 %v414_v51, %v414_v51  ;;  %v3227_v0 = vpack.c.bf16 %v415_v52, %v415_v52  ;;  %v3751_v48 = vld [vmem:[#allocation7 + $0x188] sm:$0xff]  }
 0x19e   :  { %v3228_v7 = vpack.c.bf16 %v416_v53, %v416_v53  ;;  %v3229_v8 = vpack.c.bf16 %v417_v57, %v417_v57  ;;  %v4304_v9 = vpack.c.bf16 %v418_v58, %v418_v58  ;;  %v5335_v27 = vmax.f32 %v4296_v47, 0.0 }
 0x19f   :  { %v576_v12 = vshrl.u32 %v4302_v59, 16  ;;  %v485_v17 = vshrl.u32 %v3225_v62, 16  ;;  %v488_v26 = vshll.u32 %v3225_v62, 16  ;;  %v492_v29 = vshrl.u32 %v3226_v63, 16 }
 0x1a0   :  { %v495_v30 = vshll.u32 %v3226_v63, 16  ;;  %v499_v32 = vshrl.u32 %v3227_v0, 16  ;;  %v502_v35 = vshll.u32 %v3227_v0, 16  ;;  %v506_v36 = vshrl.u32 %v3228_v7, 16 }
 0x1a1   :  { %v4312_v33 = vrot.slane %v576_v12, 7  ;;  %v487_v34 = vrot.slane %v485_v17, 7  ;;  %v494_v40 = vrot.slane %v492_v29, 7  ;;  %v509_v2 = vshll.u32 %v3228_v7, 16 }
 0x1a2   :  { %v501_v41 = vrot.slane %v499_v32, 7  ;;  %v513_v4 = vshrl.u32 %v3229_v8, 16  ;;  %v508_v39 = vrot.slane %v506_v36, 7  ;;  %v516_v42 = vshll.u32 %v3229_v8, 16 }
 0x1a3   :  { %v490_v24 = vor.u32 %v488_v26, %v487_v34  ;;  %v520_v45 = vshrl.u32 %v4304_v9, 16  ;;  %v497_v44 = vor.u32 %v495_v30, %v494_v40 }
 0x1a4   :  { %v504_v43 = vor.u32 %v502_v35, %v501_v41  ;;  %v515_v56 = vrot.slane %v513_v4, 7  ;;  %v511_v51 = vor.u32 %v509_v2, %v508_v39 }
 0x1a5   :  { %v617_v50 = vsel %vm4204_vm2, 0, %v490_v24  ;;  %v522_v52 = vrot.slane %v520_v45, 7  ;;  %v618_v57 = vsel %vm4204_vm2, 0, %v497_v44  ;;  %v3749_v44 = vld [vmem:[#allocation7 + $0x180] sm:$0xff]  }
 0x1a6   :  { %v4323_v58 = vsel %vm4208_vm5, %v617_v50, 0  ;;  %v619_v62 = vsel %vm4204_vm2, 0, %v504_v43  ;;  %v4327_v63 = vor.u32 %v516_v42, %v515_v56  ;;  %v4331_v0 = vsel %vm4208_vm5, %v618_v57, 0  ;;  %v3750_v57 = vld [vmem:[#allocation7 + $0x1c8] sm:$0xff]  }
 0x1a7   :  { %v3034_v7 = vcombine.low %v4323_v58, %v4323_v58  ;;  %v3035_v8 = vcombine.high %v4323_v58, %v4323_v58  ;;  %v620_v12 = vsel %vm4204_vm2, 0, %v511_v51  ;;  %v3036_v17 = vcombine.low %v4331_v0, %v4331_v0 }
 0x1a8   :  { %v3107_v26 = vcombine.low %v4323_v58, %v4331_v0  ;;  %v4345_v29 = vsel %vm4208_vm5, %v619_v62, 0  ;;  %v4349_v30 = vsel %vm4208_vm5, %v620_v12, 0  ;;  %v3037_v41 = vcombine.high %v4331_v0, %v4331_v0 }
 0x1a9   :  { %v3063_v32 = vrot.slane %v3034_v7, 9  ;;  %v950_v34 = vrot.slane %v3035_v8, 5  ;;  %v3038_v35 = vcombine.low %v4345_v29, %v4345_v29  ;;  %v4355_v36 = vcombine.low %v4349_v30, %v4349_v30 }
 0x1aa   :  { %1897 = vmatprep.mubr.bf16.mxu0 %v3107_v26  ;;  %v3108_v40 = vcombine.low %v4345_v29, %v4349_v30  ;;  %v746_v2 = vshrl.u32 %v3034_v7, 16  ;;  %v749_v4 = vshll.u32 %v3034_v7, 16  ;;  %v755_v39 = vshll.u32 %v3035_v8, 16 }
 0x1ab   :  { %v4363_v24 = vsel %vm4227_vm8, %v3063_v32, %v950_v34  ;;  %v760_v42 = vshrl.u32 %v3036_v17, 16  ;;  %v763_v45 = vshll.u32 %v3036_v17, 16  ;;  %v769_v51 = vshll.u32 %v3037_v41, 16 }
 0x1ac   :  { %v3099_v43 = vcombine.low %v4239_v23, %v4363_v24  ;;  %v748_v56 = vrot.slane %v746_v2, 4  ;;  %v751_v50 = vrot.slane %v749_v4, 5  ;;  %v757_v62 = vrot.slane %v755_v39, 5 }
 0x1ad   :  { %v762_v12 = vrot.slane %v760_v42, 4  ;;  %v765_v26 = vrot.slane %v763_v45, 5  ;;  %v3083_v7 = vcombine.low %v4216_v49, %v4323_v58  ;;  %v771_v34 = vrot.slane %v769_v51, 5  ;;  %v3754_v58 = vld [vmem:[#allocation7 + $0x1d0] sm:$0xff]  }
 0x1ae   :  { %1898 = vmatmul.mubr.bf16.vlgmr.msra.gmra.mrb[16].mxu0 %v3099_v43  ;;  %v752_v32 = vor.u32 %v751_v50, %v748_v56  ;;  %v3039_v8 = vcombine.high %v4345_v29, %v4345_v29  ;;  %v774_v13 = vshrl.u32 %v3038_v35, 16  ;;  %v777_v19 = vshll.u32 %v3038_v35, 16 }
 0x1af   :  { %1905 = vmatprep.mubr.bf16.mxu0 %v3108_v40  ;;  %v766_v53 = vor.u32 %v765_v26, %v762_v12  ;;  %v3064_v2 = vrot.slane %v3036_v17, 9  ;;  %v954_v4 = vrot.slane %v3037_v41, 5  ;;  %3450 = vmatpush3.bf16.msra.mxu0 %v3749_v44  ;;  %v3065_v5 = vrot.slane %v3038_v35, 9  ;;  %v3741_v35 = vld [vmem:[#allocation7 + $0x100] sm:$0xff]  }
 0x1b0   :  { %v753_v39 = vrot.slane %v752_v32, 4  ;;  %v776_v42 = vrot.slane %v774_v13, 4  ;;  %v783_v45 = vshll.u32 %v3039_v8, 16  ;;  %3451 = vmatprep.subr.bf16.mxu0 %v3750_v57  ;;  %v779_v56 = vrot.slane %v777_v19, 5  ;;  %v3742_v32 = vld [vmem:[#allocation7 + $0x148] sm:$0xff]  }
 0x1b1   :  { %v767_v43 = vrot.slane %v766_v53, 4  ;;  %v4373_v50 = vsel %vm4227_vm8, %v3064_v2, %v954_v4  ;;  %v958_v51 = vrot.slane %v3039_v8, 5  ;;  %v5333_v41 = vshll.u32 %v4304_v9, 16  ;;  %v3755_v9 = vld [vmem:[#allocation7 + $0x190] sm:$0xff]   ;;  %v3756_v2 = vld [vmem:[#allocation7 + $0x1d8] sm:$0xff]  }
 0x1b2   :  { %v4377_v40 = vsel %vm4288_vm11, %v753_v39, %v757_v62  ;;  %v785_v17 = vrot.slane %v783_v45, 5  ;;  %v621_v13 = vsel %vm4204_vm2, 0, %v4327_v63  ;;  %v780_v57 = vor.u32 %v779_v56, %v776_v42  ;;  %v3757_v56 = vld [vmem:[#allocation7 + $0x198] sm:$0xff]  }
 0x1b3   :  { %v525_v44 = vor.u32 %v5333_v41, %v522_v52  ;;  %v4386_v19 = vsel %vm4288_vm11, %v767_v43, %v771_v34  ;;  %v3091_v53 = vcombine.low %v4300_v55, %v4377_v40  ;;  %v4392_v62 = vsel %vm4227_vm8, %v3065_v5, %v958_v51  ;;  %3452 = vmatpush3.bf16.msra.mxu0 %v3751_v48 }
 0x1b4   :  { %v4398_v63 = vcombine.low %v4373_v50, %v4392_v62  ;;  %v641_v26 = vsel %vm4208_vm5, %v621_v13, 0  ;;  %3453 = vmatprep.subr.bf16.mxu0 %v3754_v58  ;;  %v781_v5 = vrot.slane %v780_v57, 4  ;;  %v4410_v8 = vcombine.low %v4331_v0, %v4345_v29  ;;  %v3743_v29 = vld [vmem:[#allocation7 + $0x108] sm:$0xff]  }
 0x1b5   :  { %v622_v12 = vsel %vm4204_vm2, 0, %v525_v44  ;;  %1800 = vmatprep.mubr.bf16.mxu1 %v3091_v53  ;;  %v3042_v34 = vcombine.low %v641_v26, %v641_v26  ;;  %v3041_v42 = vcombine.high %v4349_v30, %v4349_v30  ;;  %v788_v45 = vshrl.u32 %v4355_v36, 16  ;;  %v3744_v53 = vld [vmem:[#allocation7 + $0x150] sm:$0xff]  }
 0x1b6   :  { %5334 = vst [vmem:[#allocation28_spill] sm:$0xff] %v4398_v63  ;;  %v4406_v48 = vsel %vm4208_vm5, %v622_v12, 0  ;;  %1801 = vmatmul.mubr.bf16.vlgmr.msra.gmra.mrb[0].mxu1 %v3083_v7  ;;  %1906 = vmatmul.mubr.bf16.gmra.mrb[20].mxu0 %v4398_v63  ;;  %v4423_v0 = vsel %vm4288_vm11, %v781_v5, %v785_v17  ;;  %v3043_v7 = vcombine.high %v641_v26, %v641_v26  ;;  %v791_v58 = vshll.u32 %v4355_v36, 16  ;;  %v3760_v5 = vld [vmem:[#allocation7 + $0x1e0] sm:$0xff]  }
 0x1b7   :  { %v4415_v4 = vcombine.low %v4406_v48, %v4406_v48  ;;  %v3109_v39 = vcombine.low %v641_v26, %v4406_v48  ;;  %3386 = vmatpush3.bf16.msra.mxu1 %v3741_v35  ;;  %v802_v43 = vshrl.u32 %v3042_v34, 16  ;;  %3454 = vmatpush3.bf16.msra.mxu0 %v3755_v9  ;;  %v4428_v51 = vcombine.low %v4386_v19, %v4423_v0 }
 0x1b8   :  { %3387 = vmatprep.subr.bf16.mxu1 %v3742_v32  ;;  %v790_v41 = vrot.slane %v788_v45, 4  ;;  %v797_v44 = vshll.u32 %v3041_v42, 16  ;;  %v805_v13 = vshll.u32 %v3042_v34, 16  ;;  %v793_v35 = vrot.slane %v791_v58, 5  ;;  %3455 = vmatprep.subr.bf16.mxu0 %v3756_v2 }
 0x1b9   :  { %1913 = vmatprep.mubr.bf16.mxu0 %v3109_v39  ;;  %v804_v17 = vrot.slane %v802_v43, 4  ;;  %v811_v57 = vshll.u32 %v3043_v7, 16  ;;  %v3066_v12 = vrot.slane %v4355_v36, 9  ;;  %1808 = vmatprep.mubr.bf16.mxu1 %v4428_v51  ;;  %v962_v31 = vrot.slane %v3041_v42, 5  ;;  %v3745_v43 = vld [vmem:[#allocation7 + $0x110] sm:$0xff]  }
 0x1ba   :  { %v799_v9 = vrot.slane %v797_v44, 5  ;;  %v807_v52 = vrot.slane %v805_v13, 5  ;;  %v3067_v28 = vrot.slane %v3042_v34, 9  ;;  %v794_v39 = vor.u32 %v793_v35, %v790_v41  ;;  %v3747_v35 = vld [vmem:[#allocation7 + $0x118] sm:$0xff]  }
 0x1bb   :  { %3388 = vmatpush3.bf16.msra.mxu1 %v3743_v29  ;;  %v813_v32 = vrot.slane %v811_v57, 5  ;;  %v966_v45 = vrot.slane %v3043_v7, 5  ;;  %v3231_v58 = vpack.c.bf16 %v5335_v27, %v5335_v27  ;;  %3456 = vmatpush3.bf16.msra.mxu0 %v3757_v56  ;;  %v4437_v2 = vsel %vm4227_vm8, %v3066_v12, %v962_v31  ;;  %v3746_v29 = vld [vmem:[#allocation7 + $0x158] sm:$0xff]   ;;  %v3762_v56 = vld [vmem:[#allocation7 + $0x1e8] sm:$0xff]  }
 0x1bc   :  { %v808_v36 = vor.u32 %v807_v52, %v804_v17  ;;  %v5336_v44 = vmax.f32 %v4307_v11, 0.0  ;;  %3389 = vmatprep.subr.bf16.mxu1 %v3744_v53  ;;  %v4443_v42 = vcombine.low %v4349_v30, %v641_v26  ;;  %v795_v47 = vrot.slane %v794_v39, 4  ;;  %3457 = vmatprep.subr.bf16.mxu0 %v3760_v5  ;;  %v3763_v39 = vld [vmem:[#allocation7 + $0x1a8] sm:$0xff]  }
 0x1bd   :  { %v4447_v27 = vsel %vm4227_vm8, %v3067_v28, %v966_v45  ;;  %v527_v7 = vshrl.u32 %v3231_v58, 16  ;;  %v530_v52 = vshll.u32 %v3231_v58, 16  ;;  %v3045_v28 = vcombine.high %v4406_v48, %v4406_v48 }
 0x1be   :  { %v3232_v34 = vpack.c.bf16 %v5336_v44, %v5336_v44  ;;  %1809 = vmatmul.mubr.bf16.gmra.mrb[4].mxu1 %v4410_v8  ;;  %v809_v31 = vrot.slane %v808_v36, 4  ;;  %v4452_v11 = vcombine.low %v4437_v2, %v4447_v27  ;;  %v4456_v26 = vsel %vm4288_vm11, %v795_v47, %v799_v9  ;;  %v3752_v9 = vld [vmem:[#allocation7 + $0x160] sm:$0xff]  }
 0x1bf   :  { %v529_v13 = vrot.slane %v527_v7, 7  ;;  %3390 = vmatpush3.bf16.msra.mxu1 %v3745_v43  ;;  %v816_v53 = vshrl.u32 %v4415_v4, 16  ;;  %3458 = vmatpush3.bf16.msra.mxu0 %v3761_v22  ;;  %v819_v12 = vshll.u32 %v4415_v4, 16  ;;  %v3068_v5 = vrot.slane %v4415_v4, 9 }
 0x1c0   :  { %5337 = vst [vmem:[#allocation29_spill] sm:$0xff] %v4452_v11  ;;  %v534_v41 = vshrl.u32 %v3232_v34, 16  ;;  %v537_v30 = vshll.u32 %v3232_v34, 16  ;;  %v4463_v17 = vsel %vm4288_vm11, %v809_v31, %v813_v32  ;;  %1914 = vmatmul.mubr.bf16.gmra.mrb[24].mxu0 %v4452_v11  ;;  %3391 = vmatprep.subr.bf16.mxu1 %v3746_v29  ;;  %v825_v43 = vshll.u32 %v3045_v28, 16  ;;  %v3766_v32 = vld [vmem:[#allocation7 + $0x1f0] sm:$0xff]   ;;  %v3753_v31 = vld [vmem:[#allocation7 + $0x120] sm:$0xff]  }
 0x1c1   :  { %v4470_v45 = vcombine.low %v4456_v26, %v4463_v17  ;;  %v532_v58 = vor.u32 %v530_v52, %v529_v13  ;;  %v818_v22 = vrot.slane %v816_v53, 4  ;;  %3459 = vmatprep.subr.bf16.mxu0 %v3762_v56  ;;  %v821_v44 = vrot.slane %v819_v12, 5 }
 0x1c2   :  { %v536_v57 = vrot.slane %v534_v41, 7  ;;  %v970_v34 = vrot.slane %v3045_v28, 5  ;;  %v405_v47 = vadd.f32 %v4256_v61, %v4264_v1  ;;  %v5338_v4 = vshll.u32 %v4302_v59, 16 }
 0x1c3   :  { %1816 = vmatprep.mubr.bf16.mxu1 %v4470_v45  ;;  %v623_v7 = vsel %vm4204_vm2, 0, %v532_v58  ;;  %v827_v52 = vrot.slane %v825_v43, 5  ;;  %v406_v56 = vadd.f32 %v4256_v61, %v4268_v3  ;;  %3392 = vmatpush3.bf16.msra.mxu1 %v3747_v35  ;;  %v822_v59 = vor.u32 %v821_v44, %v818_v22  ;;  %v3767_v35 = vld [vmem:[#allocation7 + $0x1b0] sm:$0xff]   ;;  %v3759_v44 = vld [vmem:[#allocation7 + $0x128] sm:$0xff]  }
 0x1c4   :  { %v539_v36 = vor.u32 %v537_v30, %v536_v57  ;;  %v4477_v29 = vor.u32 %v5338_v4, %v4312_v33  ;;  %v643_v1 = vsel %vm4208_vm5, %v623_v7, 0  ;;  %v407_v33 = vadd.f32 %v4256_v61, %v4272_v18  ;;  %3393 = vmatprep.subr.bf16.mxu1 %v3752_v9  ;;  %v3758_v30 = vld [vmem:[#allocation7 + $0x168] sm:$0xff]   ;;  %3460 = vmatpush3.bf16.msra.mxu0 %v3763_v39  ;;  %v3768_v39 = vld [vmem:[#allocation7 + $0x1f8] sm:$0xff]  }
 0x1c5   :  { %v3046_v3 = vcombine.low %v643_v1, %v643_v1  ;;  %v3047_v28 = vcombine.high %v643_v1, %v643_v1  ;;  %v421_v53 = vmax.f32 %v405_v47, 0.0  ;;  %3461 = vmatprep.subr.bf16.mxu0 %v3766_v32  ;;  %v823_v12 = vrot.slane %v822_v59, 4 }
 0x1c6   :  { %v624_v41 = vsel %vm4204_vm2, 0, %v539_v36  ;;  %1817 = vmatmul.mubr.bf16.gmra.mrb[8].mxu1 %v4443_v42  ;;  %v4498_v18 = vsel %vm4227_vm8, %v3068_v5, %v970_v34  ;;  %v422_v9 = vmax.f32 %v406_v56, 0.0  ;;  %v4505_v59 = vcombine.low %v4406_v48, %v643_v1 }
 0x1c7   :  { %v4492_v13 = vsel %vm4208_vm5, %v624_v41, 0  ;;  %v830_v58 = vshrl.u32 %v3046_v3, 16  ;;  %v833_v22 = vshll.u32 %v3046_v3, 16  ;;  %v839_v43 = vshll.u32 %v3047_v28, 16  ;;  %3394 = vmatpush3.bf16.msra.mxu1 %v3753_v31  ;;  %v3764_v41 = vld [vmem:[#allocation7 + $0x170] sm:$0xff]  }
 0x1c8   :  { %v3110_v57 = vcombine.low %v643_v1, %v4492_v13  ;;  %v3069_v36 = vrot.slane %v3046_v3, 9  ;;  %v4502_v32 = vsel %vm4288_vm11, %v823_v12, %v827_v52  ;;  %v974_v47 = vrot.slane %v3047_v28, 5  ;;  %3395 = vmatprep.subr.bf16.mxu1 %v3758_v30  ;;  %5339 = vst [vmem:[#allocation30_spill] sm:$0xff] %v4505_v59  ;;  %3462 = vmatpush3.bf16.msra.mxu0 %v3767_v35  ;;  %v3769_v28 = vld [vmem:[#allocation7 + $0x1b8] sm:$0xff]   ;;  %v3765_v1 = vld [vmem:[#allocation7 + $0x130] sm:$0xff]  }
 0x1c9   :  { %v3233_v4 = vpack.c.bf16 %v421_v53, %v421_v53  ;;  %v3234_v7 = vpack.c.bf16 %v422_v9, %v422_v9  ;;  %v832_v5 = vrot.slane %v830_v58, 4  ;;  %v835_v34 = vrot.slane %v833_v22, 5  ;;  %3463 = vmatprep.subr.bf16.mxu0 %v3768_v39  ;;  %v3770_v39 = vld [vmem:[#allocation7 + $0x178] sm:$0xff]  }
 0x1ca   :  { %1921 = vmatprep.mubr.bf16.mxu0 %v3110_v57  ;;  %v841_v56 = vrot.slane %v839_v43, 5  ;;  %v4509_v31 = vsel %vm4227_vm8, %v3069_v36, %v974_v47  ;;  %v408_v48 = vadd.f32 %v4256_v61, %v4276_v25  ;;  %v423_v58 = vmax.f32 %v407_v33, 0.0 }
 0x1cb   :  { %v541_v3 = vshrl.u32 %v3233_v4, 16  ;;  %v544_v57 = vshll.u32 %v3233_v4, 16  ;;  %v548_v52 = vshrl.u32 %v3234_v7, 16  ;;  %v836_v53 = vor.u32 %v835_v34, %v832_v5  ;;  %3396 = vmatpush3.bf16.msra.mxu1 %v3759_v44 }
 0x1cc   :  { %v4513_v30 = vcombine.low %v4498_v18, %v4509_v31  ;;  %v551_v12 = vshll.u32 %v3234_v7, 16  ;;  %v4519_v22 = vadd.f32 %v4256_v61, %v4280_v14  ;;  %3397 = vmatprep.subr.bf16.mxu1 %v3764_v41  ;;  %v424_v36 = vmax.f32 %v408_v48, 0.0  ;;  %3464 = vmatpush3.bf16.msra.mxu0 %v3769_v28 }
 0x1cd   :  { %v543_v35 = vrot.slane %v541_v3, 7  ;;  %v550_v9 = vrot.slane %v548_v52, 7  ;;  %v837_v43 = vrot.slane %v836_v53, 4  ;;  %v630_v47 = vsel %vm4204_vm2, 0, %v4477_v29  ;;  %v4558_v53 = vld [vmem:[#allocation7 + $0x200] sm:$0xff]  }
 0x1ce   :  { %5340 = vst [vmem:[#allocation31_spill] sm:$0xff] %v4513_v30  ;;  %1922 = vmatmul.mubr.bf16.gmra.mrb[28].mxu0 %v4513_v30  ;;  %v4527_v25 = vmul.f32 %v4183_v54, %v4235_v20  ;;  %v3235_v4 = vpack.c.bf16 %v423_v58, %v423_v58  ;;  %v3236_v41 = vpack.c.bf16 %v424_v36, %v424_v36  ;;  %v4536_v5 = vsel %vm4208_vm5, %v630_v47, 0 }
 0x1cf   :  { %v546_v44 = vor.u32 %v544_v57, %v543_v35  ;;  %v553_v33 = vor.u32 %v551_v12, %v550_v9  ;;  %v4532_v7 = vsel %vm4288_vm11, %v837_v43, %v841_v56  ;;  %v4540_v29 = vmul.f32 %v4191_v60, %v4235_v20  ;;  %3398 = vmatpush3.bf16.msra.mxu1 %v3765_v1  ;;  %v3771_v57 = vld [vmem:[#allocation7 + $0x138] sm:$0xff]  }
 0x1d0   :  { %v4544_v54 = vcombine.low %v4502_v32, %v4532_v7  ;;  %v555_v3 = vshrl.u32 %v3235_v4, 16  ;;  %3399 = vmatprep.subr.bf16.mxu1 %v3770_v39  ;;  %v558_v20 = vshll.u32 %v3235_v4, 16  ;;  %v562_v28 = vshrl.u32 %v3236_v41, 16 }
 0x1d1   :  { %v625_v34 = vsel %vm4204_vm2, 0, %v546_v44  ;;  %v626_v56 = vsel %vm4204_vm2, 0, %v553_v33  ;;  %v565_v39 = vshll.u32 %v3236_v41, 16  ;;  %v5346_v10 = vcombine.low %v4377_v40, %v4386_v19  ;;  %v5348_v40 = vld [vmem:[#allocation27_spill] sm:$0xff] }
 0x1d2   :  { %5341 = vst [vmem:[#allocation32_spill] sm:$0xff] %v4544_v54  ;;  %v4552_v52 = vsel %vm4208_vm5, %v625_v34, 0  ;;  %v4556_v60 = vsel %vm4208_vm5, %v626_v56, 0  ;;  %1824 = vmatprep.mubr.bf16.mxu1 %v4544_v54  ;;  %v557_v9 = vrot.slane %v555_v3, 7  ;;  %v564_v58 = vrot.slane %v562_v28, 7 }
 0x1d3   :  { %v3048_v12 = vcombine.low %v4552_v52, %v4552_v52  ;;  %v3050_v48 = vcombine.low %v4556_v60, %v4556_v60  ;;  %v3111_v1 = vcombine.low %v4552_v52, %v4556_v60  ;;  %v3049_v35 = vcombine.high %v4552_v52, %v4552_v52  ;;  %1825 = vmatmul.mubr.bf16.gmra.mrb[12].mxu1 %v4505_v59 }
 0x1d4   :  { %v3087_v43 = vcombine.low %v4216_v49, %v4552_v52  ;;  %3400 = vmatpush3.bf16.msra.mxu1 %v3771_v57  ;;  %v560_v34 = vor.u32 %v558_v20, %v557_v9  ;;  %v567_v56 = vor.u32 %v565_v39, %v564_v58  ;;  %v3051_v14 = vcombine.high %v4556_v60, %v4556_v60 }
 0x1d5   :  { %1929 = vmatprep.mubr.bf16.mxu0 %v3111_v1  ;;  %v844_v36 = vshrl.u32 %v3048_v12, 16  ;;  %v847_v47 = vshll.u32 %v3048_v12, 16  ;;  %v853_v44 = vshll.u32 %v3049_v35, 16  ;;  %v3070_v33 = vrot.slane %v3048_v12, 9  ;;  %3593 = vmatprep.subr.bf16.mxu1 %v4558_v53 }
 0x1d6   :  { %v978_v4 = vrot.slane %v3049_v35, 5  ;;  %v858_v21 = vshrl.u32 %v3050_v48, 16  ;;  %v627_v12 = vsel %vm4204_vm2, 0, %v560_v34  ;;  %v628_v57 = vsel %vm4204_vm2, 0, %v567_v56 }
 0x1d7   :  { %v846_v3 = vrot.slane %v844_v36, 4  ;;  %v849_v28 = vrot.slane %v847_v47, 5  ;;  %v855_v41 = vrot.slane %v853_v44, 5  ;;  %v861_v20 = vshll.u32 %v3050_v48, 16 }
 0x1d8   :  { %v4577_v52 = vsel %vm4227_vm8, %v3070_v33, %v978_v4  ;;  %v647_v9 = vsel %vm4208_vm5, %v627_v12, 0  ;;  %v4589_v58 = vsel %vm4208_vm5, %v628_v57, 0  ;;  %v860_v4 = vrot.slane %v858_v21, 4 }
 0x1d9   :  { %v850_v1 = vor.u32 %v849_v28, %v846_v3  ;;  %v3103_v35 = vcombine.low %v4239_v23, %v4577_v52  ;;  %v3052_v39 = vcombine.low %v647_v9, %v647_v9  ;;  %v4593_v36 = vcombine.low %v4589_v58, %v4589_v58 }
 0x1da   :  { %v3112_v47 = vcombine.low %v647_v9, %v4589_v58  ;;  %v3053_v44 = vcombine.high %v647_v9, %v647_v9  ;;  %v863_v34 = vrot.slane %v861_v20, 5  ;;  %v867_v56 = vshll.u32 %v3051_v14, 16 }
 0x1db   :  { %v851_v33 = vrot.slane %v850_v1, 4  ;;  %1930 = vmatmul.mubr.bf16.gmra.mrb[32].mxu0 %v3103_v35  ;;  %v872_v3 = vshrl.u32 %v3052_v39, 16  ;;  %v875_v28 = vshll.u32 %v3052_v39, 16  ;;  %v3071_v16 = vrot.slane %v3050_v48, 9 }
 0x1dc   :  { %1937 = vmatprep.mubr.bf16.mxu0 %v3112_v47  ;;  %v881_v12 = vshll.u32 %v3053_v44, 16  ;;  %v864_v15 = vor.u32 %v863_v34, %v860_v4  ;;  %v869_v6 = vrot.slane %v867_v56, 5  ;;  %v982_v23 = vrot.slane %v3051_v14, 5 }
 0x1dd   :  { %v4598_v57 = vsel %vm4288_vm11, %v851_v33, %v855_v41  ;;  %v874_v1 = vrot.slane %v872_v3, 4  ;;  %v877_v35 = vrot.slane %v875_v28, 5  ;;  %v3072_v11 = vrot.slane %v3052_v39, 9 }
 0x1de   :  { %v3095_v30 = vcombine.low %v4300_v55, %v4598_v57  ;;  %v883_v21 = vrot.slane %v881_v12, 5  ;;  %v865_v20 = vrot.slane %v864_v15, 4  ;;  %v4604_v47 = vsel %vm4227_vm8, %v3071_v16, %v982_v23 }
 0x1df   :  { %v986_v48 = vrot.slane %v3053_v44, 5  ;;  %v878_v63 = vor.u32 %v877_v35, %v874_v1  ;;  %v5342_v41 = vmax.f32 %v4519_v22, 0.0  ;;  %v4611_v14 = vcombine.low %v4536_v5, %v4536_v5 }
 0x1e0   :  { %1832 = vmatprep.mubr.bf16.mxu1 %v3095_v30  ;;  %v4614_v4 = vcombine.low %v4556_v60, %v647_v9  ;;  %v4618_v15 = vsel %vm4288_vm11, %v865_v20, %v869_v6  ;;  %v3055_v23 = vcombine.high %v4589_v58, %v4589_v58  ;;  %v886_v30 = vshrl.u32 %v4593_v36, 16 }
 0x1e1   :  { %v3237_v33 = vpack.c.bf16 %v5342_v41, %v5342_v41  ;;  %1833 = vmatmul.mubr.bf16.gmra.mrb[16].mxu1 %v3087_v43  ;;  %v4622_v16 = vsel %vm4227_vm8, %v3072_v11, %v986_v48  ;;  %v879_v22 = vrot.slane %v878_v63, 4  ;;  %v889_v6 = vshll.u32 %v4593_v36, 16 }
 0x1e2   :  { %5343 = vst [vmem:[#allocation33_spill] sm:$0xff] %v4614_v4  ;;  %v4629_v39 = vcombine.low %v4604_v47, %v4622_v16  ;;  %v888_v9 = vrot.slane %v886_v30, 4  ;;  %v895_v44 = vshll.u32 %v3055_v23, 16  ;;  %v3073_v34 = vrot.slane %v4593_v36, 9 }
 0x1e3   :  { %v569_v60 = vshrl.u32 %v3237_v33, 16  ;;  %v572_v43 = vshll.u32 %v3237_v33, 16  ;;  %v4635_v11 = vsel %vm4288_vm11, %v879_v22, %v883_v21  ;;  %v990_v63 = vrot.slane %v3055_v23, 5 }
 0x1e4   :  { %5344 = vst [vmem:[#allocation34_spill] sm:$0xff] %v4629_v39  ;;  %1938 = vmatmul.mubr.bf16.gmra.mrb[36].mxu0 %v4629_v39  ;;  %v411_v3 = vadd.f32 %v4256_v61, %v4527_v25  ;;  %v4642_v28 = vcombine.low %v4618_v15, %v4635_v11  ;;  %v891_v12 = vrot.slane %v889_v6, 5  ;;  %v412_v1 = vadd.f32 %v4256_v61, %v4540_v29 }
 0x1e5   :  { %v571_v56 = vrot.slane %v569_v60, 7  ;;  %v4648_v36 = vcombine.low %v4492_v13, %v4492_v13  ;;  %v3059_v20 = vcombine.high %v4536_v5, %v4536_v5  ;;  %v897_v48 = vrot.slane %v895_v44, 5 }
 0x1e6   :  { %5345 = vst [vmem:[#allocation35_spill] sm:$0xff] %v4642_v28  ;;  %v427_v21 = vmax.f32 %v411_v3, 0.0  ;;  %1840 = vmatprep.mubr.bf16.mxu1 %v4642_v28  ;;  %v892_v25 = vor.u32 %v891_v12, %v888_v9  ;;  %v428_v41 = vmax.f32 %v412_v1, 0.0  ;;  %v914_v33 = vshrl.u32 %v4611_v14, 16 }
 0x1e7   :  { %v574_v35 = vor.u32 %v572_v43, %v571_v56  ;;  %v4658_v61 = vsel %vm4227_vm8, %v3073_v34, %v990_v63  ;;  %v917_v30 = vshll.u32 %v4611_v14, 16  ;;  %v923_v9 = vshll.u32 %v3059_v20, 16 }
 0x1e8   :  { %v3239_v29 = vpack.c.bf16 %v427_v21, %v427_v21  ;;  %v893_v60 = vrot.slane %v892_v25, 4  ;;  %v3240_v43 = vpack.c.bf16 %v428_v41, %v428_v41  ;;  %v916_v63 = vrot.slane %v914_v33, 4 }
 0x1e9   :  { %v629_v23 = vsel %vm4204_vm2, 0, %v574_v35  ;;  %1841 = vmatmul.mubr.bf16.gmra.mrb[20].mxu1 %v4614_v4  ;;  %v919_v55 = vrot.slane %v917_v30, 5  ;;  %v3075_v54 = vrot.slane %v4611_v14, 9 }
 0x1ea   :  { %v649_v22 = vsel %vm4208_vm5, %v629_v23, 0  ;;  %v583_v3 = vshrl.u32 %v3239_v29, 16  ;;  %v586_v12 = vshll.u32 %v3239_v29, 16  ;;  %v590_v1 = vshrl.u32 %v3240_v43, 16 }
 0x1eb   :  { %v3056_v6 = vcombine.low %v649_v22, %v649_v22  ;;  %v3113_v44 = vcombine.low %v649_v22, %v4536_v5  ;;  %v3057_v56 = vcombine.high %v649_v22, %v649_v22  ;;  %v593_v34 = vshll.u32 %v3240_v43, 16 }
 0x1ec   :  { %v585_v49 = vrot.slane %v583_v3, 7  ;;  %v592_v4 = vrot.slane %v590_v1, 7  ;;  %v4666_v25 = vcombine.low %v4589_v58, %v649_v22  ;;  %v4671_v29 = vsel %vm4288_vm11, %v893_v60, %v897_v48 }
 0x1ed   :  { %1945 = vmatprep.mubr.bf16.mxu0 %v3113_v44  ;;  %v900_v35 = vshrl.u32 %v3056_v6, 16  ;;  %v903_v21 = vshll.u32 %v3056_v6, 16  ;;  %v909_v39 = vshll.u32 %v3057_v56, 16  ;;  %v3074_v28 = vrot.slane %v3056_v6, 9 }
 0x1ee   :  { %v994_v23 = vrot.slane %v3057_v56, 5  ;;  %v588_v43 = vor.u32 %v586_v12, %v585_v49  ;;  %v595_v6 = vor.u32 %v593_v34, %v592_v4  ;;  %v920_v22 = vor.u32 %v919_v55, %v916_v63 }
 0x1ef   :  { %v902_v41 = vrot.slane %v900_v35, 4  ;;  %v905_v59 = vrot.slane %v903_v21, 5  ;;  %v998_v56 = vrot.slane %v3059_v20, 5  ;;  %v911_v30 = vrot.slane %v909_v39, 5 }
 0x1f0   :  { %v4675_v33 = vsel %vm4227_vm8, %v3074_v28, %v994_v23  ;;  %v631_v14 = vsel %vm4204_vm2, 0, %v588_v43  ;;  %v632_v48 = vsel %vm4204_vm2, 0, %v595_v6  ;;  %v3124_v28 = vcombine.low %v4392_v62, %v4437_v2  ;;  %v5349_v62 = vld [vmem:[#allocation30_spill] sm:$0xff]  ;;  %v3776_v2 = vld [vmem:[#allocation7 + $0x220] sm:$0xff]  }
 0x1f1   :  { %v906_v44 = vor.u32 %v905_v59, %v902_v41  ;;  %v4679_v58 = vcombine.low %v4658_v61, %v4675_v33  ;;  %v651_v49 = vsel %vm4208_vm5, %v631_v14, 0  ;;  %v4692_v55 = vsel %vm4208_vm5, %v632_v48, 0 }
 0x1f2   :  { %v925_v59 = vrot.slane %v923_v9, 5  ;;  %v3060_v4 = vcombine.low %v651_v49, %v651_v49  ;;  %v3114_v39 = vcombine.low %v651_v49, %v4692_v55  ;;  %v3061_v20 = vcombine.high %v651_v49, %v651_v49 }
 0x1f3   :  { %v907_v60 = vrot.slane %v906_v44, 4  ;;  %1946 = vmatmul.mubr.bf16.gmra.mrb[40].mxu0 %v4679_v58  ;;  %v921_v38 = vrot.slane %v920_v22, 4  ;;  %v3079_v12 = vcombine.low %v4692_v55, %v4692_v55  ;;  %v4703_v1 = vsel %vm4227_vm8, %v3075_v54, %v998_v56 }
 0x1f4   :  { %v4706_v46 = vcombine.low %v4536_v5, %v651_v49  ;;  %1953 = vmatprep.mubr.bf16.mxu0 %v3114_v39  ;;  %v928_v34 = vshrl.u32 %v3060_v4, 16  ;;  %v931_v63 = vshll.u32 %v3060_v4, 16  ;;  %v937_v35 = vshll.u32 %v3061_v20, 16 }
 0x1f5   :  { %v4697_v3 = vsel %vm4288_vm11, %v907_v60, %v911_v30  ;;  %v3076_v21 = vrot.slane %v3060_v4, 9  ;;  %v1002_v23 = vrot.slane %v3061_v20, 5  ;;  %v3116_v41 = vcombine.low %v4423_v0, %v4456_v26  ;;  %v5350_v0 = vld [vmem:[#allocation24_spill] sm:$0xff] }
 0x1f6   :  { %v4710_v9 = vcombine.low %v4671_v29, %v4697_v3  ;;  %v3125_v54 = vcombine.low %v4447_v27, %v4498_v18  ;;  %v4719_v5 = vsel %vm4288_vm11, %v921_v38, %v925_v59  ;;  %v930_v43 = vrot.slane %v928_v34, 4  ;;  %v3778_v27 = vld [vmem:[#allocation7 + $0x230] sm:$0xff]   ;;  %v5351_v18 = vld [vmem:[#allocation35_spill] sm:$0xff] }
 0x1f7   :  { %v933_v6 = vrot.slane %v931_v63, 5  ;;  %v3078_v44 = vcombine.high %v4492_v13, %v4492_v13  ;;  %v4726_v22 = vsel %vm4227_vm8, %v3076_v21, %v1002_v23  ;;  %v1015_v56 = vshrl.u32 %v4648_v36, 16 }
 0x1f8   :  { %1848 = vmatprep.mubr.bf16.mxu1 %v4710_v9  ;;  %v1018_v30 = vshll.u32 %v4648_v36, 16  ;;  %v3117_v14 = vcombine.low %v4463_v17, %v4502_v32  ;;  %v4734_v60 = vcombine.low %v4703_v1, %v4726_v22  ;;  %v3081_v59 = vrot.slane %v4648_v36, 9  ;;  %v5352_v17 = vld [vmem:[#allocation33_spill] sm:$0xff] }
 0x1f9   :  { %1849 = vmatmul.mubr.bf16.gmra.mrb[24].mxu1 %v4666_v25  ;;  %v934_v48 = vor.u32 %v933_v6, %v930_v43  ;;  %v1024_v49 = vshll.u32 %v3078_v44, 16  ;;  %v939_v4 = vrot.slane %v937_v35, 5  ;;  %v1017_v39 = vrot.slane %v1015_v56, 4 }
 0x1fa   :  { %v1020_v20 = vrot.slane %v1018_v30, 5  ;;  %v1044_v38 = vrot.slane %v3078_v44, 5  ;;  %v3127_v21 = vcombine.low %v4577_v52, %v4604_v47  ;;  %v3119_v23 = vcombine.low %v4598_v57, %v4618_v15  ;;  %v5356_v15 = vld [vmem:[#allocation28_spill] sm:$0xff] }
 0x1fb   :  { %v935_v34 = vrot.slane %v934_v48, 4  ;;  %1954 = vmatmul.mubr.bf16.gmra.mrb[44].mxu0 %v4734_v60  ;;  %v1026_v63 = vrot.slane %v1024_v49, 5  ;;  %v3080_v30 = vcombine.high %v4692_v55, %v4692_v55  ;;  %v3131_v26 = vcombine.low %v4492_v13, %v5350_v0 }
 0x1fc   :  { %2091 = vmatprep.mubr.bf16.mxu0 %v4428_v51  ;;  %v1021_v43 = vor.u32 %v1020_v20, %v1017_v39  ;;  %v4745_v36 = vsel %vm4227_vm8, %v3081_v59, %v1044_v38  ;;  %v1029_v59 = vshrl.u32 %v3079_v12, 16  ;;  %v1032_v39 = vshll.u32 %v3079_v12, 16 }
 0x1fd   :  { %v4753_v44 = vsel %vm4288_vm11, %v935_v34, %v939_v4  ;;  %v3126_v56 = vcombine.low %v4509_v31, %v4745_v36  ;;  %v3123_v4 = vcombine.low %v4363_v24, %v4373_v50  ;;  %v3121_v20 = vcombine.low %v4697_v3, %v4719_v5 }
 0x1fe   :  { %v4763_v48 = vcombine.low %v4719_v5, %v4753_v44  ;;  %v1022_v49 = vrot.slane %v1021_v43, 4  ;;  %v3082_v31 = vrot.slane %v3079_v12, 9  ;;  %v1048_v38 = vrot.slane %v3080_v30, 5 }
 0x1ff   :  { %v1031_v51 = vrot.slane %v1029_v59, 4  ;;  %v1034_v6 = vrot.slane %v1032_v39, 5  ;;  %v1038_v35 = vshll.u32 %v3080_v30, 16  ;;  %v3773_v59 = vld [vmem:[#allocation7 + $0x208] sm:$0xff]   ;;  %v5353_v13 = vcombine.low %v4622_v16, %v4658_v61  ;;  %v5359_v61 = vld [vmem:[#allocation26_spill] sm:$0xff] }
 0x200   :  { %1856 = vmatprep.mubr.bf16.mxu1 %v4763_v48  ;;  %v1027_v34 = vsel %vm4288_vm11, %v1022_v49, %v1026_v63  ;;  %v4776_v24 = vsel %vm4227_vm8, %v3082_v31, %v1048_v38  ;;  %v5354_v32 = vcombine.low %v4635_v11, %v4671_v29  ;;  %v5355_v52 = vcombine.low %v4675_v33, %v4703_v1  ;;  %v5357_v16 = vld [vmem:[#allocation29_spill] sm:$0xff]  ;;  %v5358_v11 = vld [vmem:[#allocation31_spill] sm:$0xff]  ;;  %v5360_v29 = vld [vmem:[#allocation34_spill] sm:$0xff] }
 0x201   :  { %1857 = vmatmul.mubr.bf16.gmra.mrb[28].mxu1 %v4706_v46  ;;  %v3118_v43 = vcombine.low %v4532_v7, %v1027_v34  ;;  %v1035_v50 = vor.u32 %v1034_v6, %v1031_v51  ;;  %v3130_v12 = vcombine.low %v4726_v22, %v4776_v24  ;;  %v1040_v49 = vrot.slane %v1038_v35, 5  ;;  %v3780_v22 = vld [vmem:[#allocation10] sm:$0xff]   ;;  %v3781_v35 = vld [vmem:[#allocation10 + $0x8] sm:$0xff]  }
 0x202   :  { %1994 = vmatprep.mubr.bf16.mxu1 %v3123_v4  ;;  %v3133_v19 = vcombine.low %v1027_v34, %v5348_v40  ;;  %v3132_v57 = vcombine.low %v4692_v55, %v5350_v0  ;;  %v3136_v33 = vcombine.low %v4776_v24, %v5359_v61  ;;  %v3783_v24 = vld [vmem:[#allocation10 + $0x18] sm:$0xff]  }
 0x203   :  { %2092 = vmatmul.mubr.bf16.vlgmr.msra.gmra.mrb[48].mxu0 %v4410_v8  ;;  %v1036_v63 = vrot.slane %v1035_v50, 4  ;;  %v3774_v8 = vld [vmem:[#allocation7 + $0x210] sm:$0xff]  }
 0x204   :  { %2099 = vmatprep.mubr.bf16.mxu0 %v4470_v45  ;;  %v5347_v45 = vld [vmem:[#allocation32_spill] sm:$0xff] }
 0x205   :  { %v1041_v30 = vsel %vm4288_vm11, %v1036_v63, %v1040_v49 }
 0x206   :  { %v3122_v7 = vcombine.low %v4753_v44, %v1041_v30  ;;  %v3134_v47 = vcombine.low %v1041_v30, %v5348_v40 }
 0x209   :  { %1995 = vmatmul.mubr.bf16.vlgmr.msra.gmra.mrb[32].mxu1 %v5346_v10 }
 0x20a   :  { %3594 = vmatpush3.bf16.msra.mxu1 %v4558_v53  ;;  %2002 = vmatprep.mubr.bf16.mxu1 %v3124_v28  ;;  %v3779_v53 = vld [vmem:[#allocation7 + $0x238] sm:$0xff]   ;;  %v5361_v28 = vld [vmem:[#allocation16_spill] sm:$0xff] }
 0x20b   :  { %2100 = vmatmul.mubr.bf16.gmra.mrb[52].mxu0 %v4443_v42  ;;  %3595 = vmatprep.subr.bf16.mxu1 %v3773_v59  ;;  %v3777_v42 = vld [vmem:[#allocation7 + $0x228] sm:$0xff]  }
 0x20c   :  { %2107 = vmatprep.mubr.bf16.mxu0 %v5347_v45 }
 0x20e   :  { %3596 = vmatpush3.bf16.msra.mxu1 %v3773_v59 }
 0x20f   :  { %3597 = vmatprep.subr.bf16.mxu1 %v3774_v8 }
 0x211   :  { %2003 = vmatmul.mubr.bf16.gmra.mrb[36].mxu1 %v3116_v41 }
 0x212   :  { %2010 = vmatprep.mubr.bf16.mxu1 %v3125_v54  ;;  %3598 = vmatpush3.bf16.msra.mxu1 %v3774_v8 }
 0x213   :  { %2108 = vmatmul.mubr.bf16.gmra.mrb[56].mxu0 %v5349_v62  ;;  %3599 = vmatprep.subr.bf16.mxu1 %v3775_v37 }
 0x214   :  { %2115 = vmatprep.mubr.bf16.mxu0 %v3133_v19 }
 0x216   :  { %3600 = vmatpush3.bf16.msra.mxu1 %v3775_v37  ;;  %v3784_v37 = vld [vmem:[#allocation10 + $0x20] sm:$0xff]  }
 0x217   :  { %3601 = vmatprep.subr.bf16.mxu1 %v3776_v2 }
 0x219   :  { %2011 = vmatmul.mubr.bf16.gmra.mrb[40].mxu1 %v3117_v14 }
 0x21a   :  { %2018 = vmatprep.mubr.bf16.mxu1 %v3126_v56  ;;  %3602 = vmatpush3.bf16.msra.mxu1 %v3776_v2 }
 0x21b   :  { %2116 = vmatmul.mubr.bf16.gmra.mrb[60].mxu0 %v3131_v26  ;;  %3603 = vmatprep.subr.bf16.mxu1 %v3777_v42  ;;  %v3785_v26 = vld [vmem:[#allocation10 + $0x28] sm:$0xff]  }
 0x21c   :  { %2123 = vmatprep.mubr.bf16.mxu0 %v5351_v18 }
 0x21e   :  { %3604 = vmatpush3.bf16.msra.mxu1 %v3777_v42 }
 0x21f   :  { %3605 = vmatprep.subr.bf16.mxu1 %v3778_v27 }
 0x221   :  { %2019 = vmatmul.mubr.bf16.gmra.mrb[44].mxu1 %v3118_v43 }
 0x222   :  { %2026 = vmatprep.mubr.bf16.mxu1 %v3127_v21  ;;  %3606 = vmatpush3.bf16.msra.mxu1 %v3778_v27 }
 0x223   :  { %2124 = vmatmul.mubr.bf16.gmra.mrb[64].mxu0 %v5352_v17  ;;  %3607 = vmatprep.subr.bf16.mxu1 %v3779_v53 }
 0x224   :  { %2131 = vmatprep.mubr.bf16.mxu0 %v4710_v9 }
 0x226   :  { %3608 = vmatpush3.bf16.msra.mxu1 %v3779_v53 }
 0x227   :  { %3657 = vmatprep.subr.bf16.mxu1 %v3780_v22 }
 0x229   :  { %2027 = vmatmul.mubr.bf16.gmra.mrb[48].mxu1 %v3119_v23 }
 0x22a   :  { %2034 = vmatprep.mubr.bf16.mxu1 %v5353_v13 }
 0x22b   :  { %2132 = vmatmul.mubr.bf16.gmra.mrb[68].mxu0 %v4666_v25  ;;  %v3135_v25 = vcombine.low %v4745_v36, %v5359_v61 }
 0x22c   :  { %2139 = vmatprep.mubr.bf16.mxu0 %v4763_v48 }
 0x231   :  { %2035 = vmatmul.mubr.bf16.gmra.mrb[52].mxu1 %v5354_v32 }
 0x232   :  { %2042 = vmatprep.mubr.bf16.mxu1 %v5355_v52 }
 0x233   :  { %2140 = vmatmul.mubr.bf16.gmra.mrb[72].mxu0 %v4706_v46 }
 0x234   :  { %2147 = vmatprep.mubr.bf16.mxu0 %v3134_v47  ;;  %v3786_v47 = vld [vmem:[#allocation10 + $0x30] sm:$0xff]  }
 0x239   :  { %2043 = vmatmul.mubr.bf16.gmra.mrb[56].mxu1 %v3121_v20  ;;  %v3782_v20 = vld [vmem:[#allocation10 + $0x10] sm:$0xff]  }
 0x23a   :  { %2050 = vmatprep.mubr.bf16.mxu1 %v3130_v12 }
 0x23b   :  { %2148 = vmatmul.mubr.bf16.gmra.mrb[76].mxu0 %v3132_v57 }
 0x241   :  { %2051 = vmatmul.mubr.bf16.gmra.mrb[60].mxu1 %v3122_v7 }
 0x242   :  { %3609 = vmatprep.mubr.bf16.mxu1 %v5356_v15  ;;  %v3787_v15 = vld [vmem:[#allocation10 + $0x38] sm:$0xff]  }
 0x249   :  { %3610 = vmatmul.mubr.bf16.vlgmr.msra.gmra.mrb[64].mxu1 %v5357_v16 }
 0x24a   :  { %3613 = vmatprep.mubr.bf16.mxu1 %v5358_v11  ;;  %3658 = vmatpush3.bf16.msra.mxu1 %v3780_v22 }
 0x24b   :  { %3659 = vmatprep.subr.bf16.mxu1 %v3781_v35 }
 0x24e   :  { %3660 = vmatpush3.bf16.msra.mxu1 %v3781_v35 }
 0x24f   :  { %3661 = vmatprep.subr.bf16.mxu1 %v3782_v20 }
 0x251   :  { %3614 = vmatmul.mubr.bf16.gmra.mrb[68].mxu1 %v3135_v25 }
 0x252   :  { %3617 = vmatprep.mubr.bf16.mxu1 %v5360_v29  ;;  %3662 = vmatpush3.bf16.msra.mxu1 %v3782_v20  ;;  %v5365_v20 = vld [vmem:[#allocation20_spill] sm:$0xff] }
 0x253   :  { %3663 = vmatprep.subr.bf16.mxu1 %v3783_v24 }
 0x256   :  { %3664 = vmatpush3.bf16.msra.mxu1 %v3783_v24 }
 0x257   :  { %3665 = vmatprep.subr.bf16.mxu1 %v3784_v37 }
 0x259   :  { %3618 = vmatmul.mubr.bf16.gmra.mrb[72].mxu1 %v4679_v58 }
 0x25a   :  { %3621 = vmatprep.mubr.bf16.mxu1 %v4734_v60  ;;  %3666 = vmatpush3.bf16.msra.mxu1 %v3784_v37 }
 0x25b   :  { %3667 = vmatprep.subr.bf16.mxu1 %v3785_v26 }
 0x25e   :  { %3668 = vmatpush3.bf16.msra.mxu1 %v3785_v26 }
 0x25f   :  { %3669 = vmatprep.subr.bf16.mxu1 %v3786_v47 }
 0x261   :  { %3622 = vmatmul.mubr.bf16.gmra.mrb[76].mxu1 %v3136_v33 }
 0x262   :  { %3673 = vmatprep.mubr.bf16.mxu1 %v5361_v28  ;;  %3670 = vmatpush3.bf16.msra.mxu1 %v3786_v47 }
 0x263   :  { %3671 = vmatprep.subr.bf16.mxu1 %v3787_v15 }
 0x266   :  { %3672 = vmatpush3.bf16.msra.mxu1 %v3787_v15 }
 0x281   :  { %v3337_v55 = vpop.f32.mrb[16].mxu0 }
 0x282   :  { %v3338_v3 = vpop.f32.mrb[17].mxu0 }
 0x283   :  { %v3339_v1 = vadd.f32 %v3338_v3, %v3337_v55  ;;  %v3340_v46 = vpop.f32.mrb[18].mxu0 }
 0x284   :  { %v3341_v9 = vpop.f32.mrb[19].mxu0 }
 0x285   :  { %v3342_v41 = vadd.f32 %v3341_v9, %v3340_v46  ;;  %v5362_v9 = vld [vmem:[#allocation17_spill] sm:$0xff] }
 0x286   :  { %3674 = vmatmul.mubr.bf16.vlgmr.msra.gmra.mrb[80].mxu1 %v5362_v9 }
 0x289   :  { %v3273_v54 = vpop.f32.mrb[0].mxu1  ;;  %v3343_v5 = vpop.f32.mrb[20].mxu0 }
 0x28a   :  { %v3274_v14 = vpop.f32.mrb[1].mxu1  ;;  %v3344_v21 = vpop.f32.mrb[21].mxu0 }
 0x28b   :  { %v3275_v58 = vadd.f32 %v3274_v14, %v3273_v54  ;;  %v3276_v23 = vpop.f32.mrb[2].mxu1  ;;  %v3345_v60 = vadd.f32 %v3344_v21, %v3343_v5  ;;  %v3346_v36 = vpop.f32.mrb[22].mxu0  ;;  %v5363_v54 = vld [vmem:[#allocation18_spill] sm:$0xff] }
 0x28c   :  { %v3277_v6 = vpop.f32.mrb[3].mxu1  ;;  %v3347_v44 = vpop.f32.mrb[23].mxu0  ;;  %3677 = vmatprep.mubr.bf16.mxu1 %v5363_v54 }
 0x28d   :  { %v4845_v56 = vadd.f32 %v3339_v1, %v3275_v58  ;;  %v3278_v51 = vadd.f32 %v3277_v6, %v3276_v23  ;;  %v3348_v48 = vadd.f32 %v3347_v44, %v3346_v36  ;;  %v3788_v23 = vld [vmem:[#allocation8] sm:$0xff]  }
 0x28e   :  { %3625 = vmatprep.subr.bf16.mxu0 %v3788_v23 }
 0x28f   :  { %v4847_v39 = vadd.f32 %v3342_v41, %v3278_v51  ;;  %v5364_v51 = vld [vmem:[#allocation19_spill] sm:$0xff]  ;;  %3626 = vmatpush3.bf16.msra.mxu0 %v3788_v23 }
 0x290   :  { %3678 = vmatmul.mubr.bf16.gmra.mrb[84].mxu1 %v5364_v51 }
 0x291   :  { %v3279_v4 = vpop.f32.mrb[4].mxu1  ;;  %3681 = vmatprep.mubr.bf16.mxu1 %v5365_v20 }
 0x292   :  { %v3280_v31 = vpop.f32.mrb[5].mxu1 }
 0x293   :  { %v3281_v38 = vadd.f32 %v3280_v31, %v3279_v4  ;;  %v3349_v34 = vpop.f32.mrb[24].mxu0  ;;  %v3282_v43 = vpop.f32.mrb[6].mxu1 }
 0x294   :  { %v3350_v50 = vpop.f32.mrb[25].mxu0  ;;  %v3283_v12 = vpop.f32.mrb[7].mxu1 }
 0x295   :  { %v4849_v63 = vadd.f32 %v3345_v60, %v3281_v38  ;;  %v3351_v49 = vadd.f32 %v3350_v50, %v3349_v34  ;;  %v3284_v30 = vadd.f32 %v3283_v12, %v3282_v43  ;;  %v3352_v59 = vpop.f32.mrb[26].mxu0 }
 0x296   :  { %v3353_v7 = vpop.f32.mrb[27].mxu0 }
 0x297   :  { %v4851_v10 = vadd.f32 %v3348_v48, %v3284_v30  ;;  %v3354_v8 = vadd.f32 %v3353_v7, %v3352_v59  ;;  %v5366_v7 = vld [vmem:[#allocation21_spill] sm:$0xff] }
 0x298   :  { %3682 = vmatmul.mubr.bf16.gmra.mrb[88].mxu1 %v5366_v7 }
 0x299   :  { %v3285_v45 = vpop.f32.mrb[8].mxu1 }
 0x29a   :  { %v3286_v40 = vpop.f32.mrb[9].mxu1 }
 0x29b   :  { %v3287_v19 = vadd.f32 %v3286_v40, %v3285_v45  ;;  %v3288_v62 = vpop.f32.mrb[10].mxu1 }
 0x29c   :  { %v3289_v2 = vpop.f32.mrb[11].mxu1 }
 0x29d   :  { %v4853_v42 = vadd.f32 %v3351_v49, %v3287_v19  ;;  %v3290_v0 = vadd.f32 %v3289_v2, %v3288_v62 }
 0x29f   :  { %v4855_v27 = vadd.f32 %v3354_v8, %v3290_v0  ;;  %v5367_v8 = vld [vmem:[#allocation22_spill] sm:$0xff]  ;;  %v5368_v0 = vld [vmem:[#allocation23_spill] sm:$0xff] }
 0x2a0   :  { %3685 = vmatprep.mubr.bf16.mxu1 %v5367_v8 }
 0x2a1   :  { %v3355_v18 = vpop.f32.mrb[28].mxu0  ;;  %3686 = vmatmul.mubr.bf16.gmra.mrb[92].mxu1 %v5368_v0 }
 0x2a2   :  { %v3356_v53 = vpop.f32.mrb[29].mxu0 }
 0x2a3   :  { %v3357_v17 = vadd.f32 %v3356_v53, %v3355_v18  ;;  %v3358_v13 = vpop.f32.mrb[30].mxu0 }
 0x2a4   :  { %v3359_v32 = vpop.f32.mrb[31].mxu0 }
 0x2a5   :  { %v3360_v52 = vadd.f32 %v3359_v32, %v3358_v13 }
 0x2a6   :  { %v3291_v57 = vpop.f32.mrb[12].mxu1 }
 0x2a7   :  { %v3292_v16 = vpop.f32.mrb[13].mxu1 }
 0x2a8   :  { %v3293_v11 = vadd.f32 %v3292_v16, %v3291_v57  ;;  %v3294_v61 = vpop.f32.mrb[14].mxu1 }
 0x2a9   :  { %v3295_v25 = vpop.f32.mrb[15].mxu1 }
 0x2aa   :  { %v4857_v29 = vadd.f32 %v3357_v17, %v3293_v11  ;;  %v3296_v33 = vadd.f32 %v3295_v25, %v3294_v61 }
 0x2ac   :  { %v4859_v28 = vadd.f32 %v3360_v52, %v3296_v33 }
 0x2ae   :  { %v3361_v55 = vpop.f32.mrb[32].mxu0 }
 0x2af   :  { %v3362_v3 = vpop.f32.mrb[33].mxu0 }
 0x2b0   :  { %v3363_v1 = vadd.f32 %v3362_v3, %v3361_v55  ;;  %v3364_v46 = vpop.f32.mrb[34].mxu0 }
 0x2b1   :  { %v3365_v41 = vpop.f32.mrb[35].mxu0 }
 0x2b2   :  { %v3366_v5 = vadd.f32 %v3365_v41, %v3364_v46 }
 0x2b4   :  { %v3297_v22 = vpop.f32.mrb[16].mxu1 }
 0x2b5   :  { %v3298_v14 = vpop.f32.mrb[17].mxu1 }
 0x2b6   :  { %v3299_v21 = vadd.f32 %v3298_v14, %v3297_v22  ;;  %v3300_v58 = vpop.f32.mrb[18].mxu1 }
 0x2b7   :  { %v3367_v60 = vpop.f32.mrb[36].mxu0  ;;  %v3301_v36 = vpop.f32.mrb[19].mxu1 }
 0x2b8   :  { %v4863_v35 = vadd.f32 %v3363_v1, %v3299_v21  ;;  %v3368_v6 = vpop.f32.mrb[37].mxu0  ;;  %v3302_v44 = vadd.f32 %v3301_v36, %v3300_v58 }
 0x2b9   :  { %v3369_v48 = vadd.f32 %v3368_v6, %v3367_v60  ;;  %v3370_v4 = vpop.f32.mrb[38].mxu0 }
 0x2ba   :  { %v4867_v31 = vadd.f32 %v3366_v5, %v3302_v44  ;;  %v3371_v38 = vpop.f32.mrb[39].mxu0 }
 0x2bb   :  { %v3372_v34 = vadd.f32 %v3371_v38, %v3370_v4 }
 0x2bc   :  { %v3303_v43 = vpop.f32.mrb[20].mxu1 }
 0x2bd   :  { %v3304_v24 = vpop.f32.mrb[21].mxu1 }
 0x2be   :  { %v3305_v50 = vadd.f32 %v3304_v24, %v3303_v43  ;;  %v3306_v12 = vpop.f32.mrb[22].mxu1 }
 0x2bf   :  { %v3307_v49 = vpop.f32.mrb[23].mxu1 }
 0x2c0   :  { %v4869_v30 = vadd.f32 %v3369_v48, %v3305_v50  ;;  %v3308_v59 = vadd.f32 %v3307_v49, %v3306_v12 }
 0x2c2   :  { %v4873_v45 = vadd.f32 %v3372_v34, %v3308_v59 }
 0x2c6   :  { %v3373_v37 = vpop.f32.mrb[40].mxu0 }
 0x2c7   :  { %v3374_v40 = vpop.f32.mrb[41].mxu0 }
 0x2c8   :  { %v3375_v19 = vadd.f32 %v3374_v40, %v3373_v37  ;;  %v3376_v62 = vpop.f32.mrb[42].mxu0 }
 0x2c9   :  { %v3377_v2 = vpop.f32.mrb[43].mxu0 }
 0x2ca   :  { %v3378_v26 = vadd.f32 %v3377_v2, %v3376_v62 }
 0x2cc   :  { %v3309_v18 = vpop.f32.mrb[24].mxu1 }
 0x2cd   :  { %v3310_v53 = vpop.f32.mrb[25].mxu1 }
 0x2ce   :  { %v3311_v17 = vadd.f32 %v3310_v53, %v3309_v18  ;;  %v3312_v13 = vpop.f32.mrb[26].mxu1  ;;  %v3379_v32 = vpop.f32.mrb[44].mxu0 }
 0x2cf   :  { %v3313_v52 = vpop.f32.mrb[27].mxu1  ;;  %v3380_v57 = vpop.f32.mrb[45].mxu0 }
 0x2d0   :  { %v4876_v47 = vadd.f32 %v3375_v19, %v3311_v17  ;;  %v3314_v15 = vadd.f32 %v3313_v52, %v3312_v13  ;;  %v3381_v16 = vadd.f32 %v3380_v57, %v3379_v32  ;;  %v3382_v11 = vpop.f32.mrb[46].mxu0 }
 0x2d1   :  { %v3383_v25 = vpop.f32.mrb[47].mxu0 }
 0x2d2   :  { %v4878_v61 = vadd.f32 %v3378_v26, %v3314_v15  ;;  %v3384_v33 = vadd.f32 %v3383_v25, %v3382_v11  ;;  %v3789_v26 = vld [vmem:[#allocation8 + $0x8] sm:$0xff]   ;;  %v3791_v15 = vld [vmem:[#allocation8 + $0x18] sm:$0xff]  }
 0x2d3   :  { %3627 = vmatprep.subr.bf16.mxu0 %v3789_v26 }
 0x2d4   :  { %v3315_v55 = vpop.f32.mrb[28].mxu1  ;;  %3628 = vmatpush3.bf16.msra.mxu0 %v3789_v26 }
 0x2d5   :  { %v3316_v3 = vpop.f32.mrb[29].mxu1 }
 0x2d6   :  { %v3317_v1 = vadd.f32 %v3316_v3, %v3315_v55  ;;  %v3465_v46 = vpop.f32.mrb[48].mxu0  ;;  %v3318_v9 = vpop.f32.mrb[30].mxu1 }
 0x2d7   :  { %v3466_v41 = vpop.f32.mrb[49].mxu0  ;;  %v3319_v54 = vpop.f32.mrb[31].mxu1 }
 0x2d8   :  { %v4880_v5 = vadd.f32 %v3381_v16, %v3317_v1  ;;  %v3467_v22 = vadd.f32 %v3466_v41, %v3465_v46  ;;  %v3320_v14 = vadd.f32 %v3319_v54, %v3318_v9  ;;  %v3468_v21 = vpop.f32.mrb[50].mxu0  ;;  %v3792_v46 = vld [vmem:[#allocation8 + $0x20] sm:$0xff]  }
 0x2d9   :  { %v3469_v58 = vpop.f32.mrb[51].mxu0 }
 0x2da   :  { %v4882_v23 = vadd.f32 %v3384_v33, %v3320_v14  ;;  %v3470_v60 = vadd.f32 %v3469_v58, %v3468_v21 }
 0x2dc   :  { %v3401_v36 = vpop.f32.mrb[32].mxu1 }
 0x2dd   :  { %v3402_v6 = vpop.f32.mrb[33].mxu1 }
 0x2de   :  { %v3403_v44 = vadd.f32 %v3402_v6, %v3401_v36  ;;  %v3471_v51 = vpop.f32.mrb[52].mxu0  ;;  %v3404_v48 = vpop.f32.mrb[34].mxu1 }
 0x2df   :  { %v3472_v4 = vpop.f32.mrb[53].mxu0  ;;  %v3405_v20 = vpop.f32.mrb[35].mxu1 }
 0x2e0   :  { %v1997_v38 = vadd.f32 %v3403_v44, %v4845_v56  ;;  %v3473_v34 = vadd.f32 %v3472_v4, %v3471_v51  ;;  %v3406_v43 = vadd.f32 %v3405_v20, %v3404_v48  ;;  %v3474_v24 = vpop.f32.mrb[54].mxu0  ;;  %v3790_v56 = vld [vmem:[#allocation8 + $0x10] sm:$0xff]  }
 0x2e1   :  { %v3475_v50 = vpop.f32.mrb[55].mxu0  ;;  %3629 = vmatprep.subr.bf16.mxu0 %v3790_v56 }
 0x2e2   :  { %v2000_v12 = vadd.f32 %v3406_v43, %v4847_v39  ;;  %v3476_v49 = vadd.f32 %v3475_v50, %v3474_v24  ;;  %v4886_v59 = vadd.f32 %v3467_v22, %v1997_v38  ;;  %3630 = vmatpush3.bf16.msra.mxu0 %v3790_v56  ;;  %v3794_v38 = vld [vmem:[#allocation8 + $0x30] sm:$0xff]  }
 0x2e3   :  { %3631 = vmatprep.subr.bf16.mxu0 %v3791_v15 }
 0x2e4   :  { %v3407_v7 = vpop.f32.mrb[36].mxu1  ;;  %v4888_v8 = vadd.f32 %v3470_v60, %v2000_v12  ;;  %v3793_v60 = vld [vmem:[#allocation8 + $0x28] sm:$0xff]  }
 0x2e5   :  { %v3408_v37 = vpop.f32.mrb[37].mxu1 }
 0x2e6   :  { %v3409_v40 = vadd.f32 %v3408_v37, %v3407_v7  ;;  %v3477_v19 = vpop.f32.mrb[56].mxu0  ;;  %v3410_v62 = vpop.f32.mrb[38].mxu1  ;;  %3632 = vmatpush3.bf16.msra.mxu0 %v3791_v15  ;;  %v3795_v37 = vld [vmem:[#allocation8 + $0x38] sm:$0xff]  }
 0x2e7   :  { %v3478_v2 = vpop.f32.mrb[57].mxu0  ;;  %v3411_v0 = vpop.f32.mrb[39].mxu1  ;;  %3633 = vmatprep.subr.bf16.mxu0 %v3792_v46 }
 0x2e8   :  { %v2005_v18 = vadd.f32 %v3409_v40, %v4849_v63  ;;  %v3479_v53 = vadd.f32 %v3478_v2, %v3477_v19  ;;  %v3412_v17 = vadd.f32 %v3411_v0, %v3410_v62  ;;  %v3480_v13 = vpop.f32.mrb[58].mxu0 }
 0x2e9   :  { %v3481_v39 = vpop.f32.mrb[59].mxu0 }
 0x2ea   :  { %v2008_v32 = vadd.f32 %v3412_v17, %v4851_v10  ;;  %v3482_v52 = vadd.f32 %v3481_v39, %v3480_v13  ;;  %v4892_v57 = vadd.f32 %v3473_v34, %v2005_v18  ;;  %3634 = vmatpush3.bf16.msra.mxu0 %v3792_v46 }
 0x2eb   :  { %3635 = vmatprep.subr.bf16.mxu0 %v3793_v60 }
 0x2ec   :  { %v3413_v16 = vpop.f32.mrb[40].mxu1  ;;  %v4894_v11 = vadd.f32 %v3476_v49, %v2008_v32 }
 0x2ed   :  { %v3414_v25 = vpop.f32.mrb[41].mxu1 }
 0x2ee   :  { %v3415_v33 = vadd.f32 %v3414_v25, %v3413_v16  ;;  %v3483_v55 = vpop.f32.mrb[60].mxu0  ;;  %v3416_v63 = vpop.f32.mrb[42].mxu1  ;;  %3636 = vmatpush3.bf16.msra.mxu0 %v3793_v60 }
 0x2ef   :  { %v3484_v3 = vpop.f32.mrb[61].mxu0  ;;  %v3417_v1 = vpop.f32.mrb[43].mxu1  ;;  %3637 = vmatprep.subr.bf16.mxu0 %v3794_v38 }
 0x2f0   :  { %v2013_v10 = vadd.f32 %v3415_v33, %v4853_v42  ;;  %v3485_v9 = vadd.f32 %v3484_v3, %v3483_v55  ;;  %v3418_v41 = vadd.f32 %v3417_v1, %v3416_v63  ;;  %v3486_v54 = vpop.f32.mrb[62].mxu0 }
 0x2f1   :  { %v3487_v22 = vpop.f32.mrb[63].mxu0 }
 0x2f2   :  { %v2016_v14 = vadd.f32 %v3418_v41, %v4855_v27  ;;  %v3488_v21 = vadd.f32 %v3487_v22, %v3486_v54  ;;  %v4898_v58 = vadd.f32 %v3479_v53, %v2013_v10  ;;  %3638 = vmatpush3.bf16.msra.mxu0 %v3794_v38 }
 0x2f3   :  { %3639 = vmatprep.subr.bf16.mxu0 %v3795_v37 }
 0x2f4   :  { %v3419_v36 = vpop.f32.mrb[44].mxu1  ;;  %v4900_v6 = vadd.f32 %v3482_v52, %v2016_v14 }
 0x2f5   :  { %v3420_v44 = vpop.f32.mrb[45].mxu1 }
 0x2f6   :  { %v3421_v51 = vadd.f32 %v3420_v44, %v3419_v36  ;;  %v3489_v48 = vpop.f32.mrb[64].mxu0  ;;  %v3422_v4 = vpop.f32.mrb[46].mxu1  ;;  %3640 = vmatpush3.bf16.msra.mxu0 %v3795_v37 }
 0x2f7   :  { %v3490_v42 = vpop.f32.mrb[65].mxu0  ;;  %v3423_v20 = vpop.f32.mrb[47].mxu1 }
 0x2f8   :  { %v2021_v27 = vadd.f32 %v3421_v51, %v4857_v29  ;;  %v3491_v34 = vadd.f32 %v3490_v42, %v3489_v48  ;;  %v3424_v43 = vadd.f32 %v3423_v20, %v3422_v4  ;;  %v3492_v24 = vpop.f32.mrb[66].mxu0 }
 0x2f9   :  { %v3493_v50 = vpop.f32.mrb[67].mxu0 }
 0x2fa   :  { %v2024_v12 = vadd.f32 %v3424_v43, %v4859_v28  ;;  %v3494_v49 = vadd.f32 %v3493_v50, %v3492_v24  ;;  %v4904_v7 = vadd.f32 %v3485_v9, %v2021_v27 }
 0x2fc   :  { %v3425_v40 = vpop.f32.mrb[48].mxu1  ;;  %v4906_v19 = vadd.f32 %v3488_v21, %v2024_v12 }
 0x2fd   :  { %v3426_v62 = vpop.f32.mrb[49].mxu1 }
 0x2fe   :  { %v3427_v2 = vadd.f32 %v3426_v62, %v3425_v40  ;;  %v3495_v0 = vpop.f32.mrb[68].mxu0  ;;  %v3428_v26 = vpop.f32.mrb[50].mxu1 }
 0x2ff   :  { %v3496_v29 = vpop.f32.mrb[69].mxu0  ;;  %v3429_v56 = vpop.f32.mrb[51].mxu1 }
 0x300   :  { %v2029_v18 = vadd.f32 %v3427_v2, %v4863_v35  ;;  %v3497_v28 = vadd.f32 %v3496_v29, %v3495_v0  ;;  %v3430_v53 = vadd.f32 %v3429_v56, %v3428_v26  ;;  %v3498_v17 = vpop.f32.mrb[70].mxu0 }
 0x301   :  { %v3499_v13 = vpop.f32.mrb[71].mxu0 }
 0x302   :  { %v2032_v39 = vadd.f32 %v3430_v53, %v4867_v31  ;;  %v3500_v32 = vadd.f32 %v3499_v13, %v3498_v17  ;;  %v4910_v52 = vadd.f32 %v3491_v34, %v2029_v18 }
 0x304   :  { %v3431_v15 = vpop.f32.mrb[52].mxu1  ;;  %v4912_v16 = vadd.f32 %v3494_v49, %v2032_v39 }
 0x305   :  { %v3432_v25 = vpop.f32.mrb[53].mxu1 }
 0x306   :  { %v3433_v33 = vadd.f32 %v3432_v25, %v3431_v15  ;;  %v3501_v55 = vpop.f32.mrb[72].mxu0  ;;  %v3434_v63 = vpop.f32.mrb[54].mxu1 }
 0x307   :  { %v3502_v3 = vpop.f32.mrb[73].mxu0  ;;  %v3435_v1 = vpop.f32.mrb[55].mxu1 }
 0x308   :  { %v2037_v35 = vadd.f32 %v3433_v33, %v4869_v30  ;;  %v3503_v46 = vadd.f32 %v3502_v3, %v3501_v55  ;;  %v3436_v10 = vadd.f32 %v3435_v1, %v3434_v63  ;;  %v3504_v9 = vpop.f32.mrb[74].mxu0 }
 0x309   :  { %v3505_v41 = vpop.f32.mrb[75].mxu0 }
 0x30a   :  { %v2040_v31 = vadd.f32 %v3436_v10, %v4873_v45  ;;  %v3506_v54 = vadd.f32 %v3505_v41, %v3504_v9  ;;  %v4916_v22 = vadd.f32 %v3497_v28, %v2037_v35 }
 0x30c   :  { %v3437_v14 = vpop.f32.mrb[56].mxu1  ;;  %v4918_v21 = vadd.f32 %v3500_v32, %v2040_v31 }
 0x30d   :  { %v3438_v60 = vpop.f32.mrb[57].mxu1 }
 0x30e   :  { %v3439_v36 = vadd.f32 %v3438_v60, %v3437_v14  ;;  %v3507_v44 = vpop.f32.mrb[76].mxu0  ;;  %v3440_v51 = vpop.f32.mrb[58].mxu1 }
 0x30f   :  { %v3508_v48 = vpop.f32.mrb[77].mxu0  ;;  %v3441_v4 = vpop.f32.mrb[59].mxu1 }
 0x310   :  { %v2045_v30 = vadd.f32 %v3439_v36, %v4876_v47  ;;  %v3509_v42 = vadd.f32 %v3508_v48, %v3507_v44  ;;  %v3442_v20 = vadd.f32 %v3441_v4, %v3440_v51  ;;  %v3510_v38 = vpop.f32.mrb[78].mxu0 }
 0x311   :  { %v3511_v27 = vpop.f32.mrb[79].mxu0 }
 0x312   :  { %v2048_v45 = vadd.f32 %v3442_v20, %v4878_v61  ;;  %v3512_v34 = vadd.f32 %v3511_v27, %v3510_v38  ;;  %v4922_v43 = vadd.f32 %v3503_v46, %v2045_v30 }
 0x314   :  { %v3443_v24 = vpop.f32.mrb[60].mxu1  ;;  %v4924_v50 = vadd.f32 %v3506_v54, %v2048_v45 }
 0x315   :  { %v3444_v12 = vpop.f32.mrb[61].mxu1 }
 0x316   :  { %v3445_v49 = vadd.f32 %v3444_v12, %v3443_v24  ;;  %v3446_v37 = vpop.f32.mrb[62].mxu1 }
 0x317   :  { %v3447_v40 = vpop.f32.mrb[63].mxu1 }
 0x318   :  { %v2053_v62 = vadd.f32 %v3445_v49, %v4880_v5  ;;  %v3448_v2 = vadd.f32 %v3447_v40, %v3446_v37 }
 0x31a   :  { %v2056_v47 = vadd.f32 %v3448_v2, %v4882_v23  ;;  %v2150_v0 = vadd.f32 %v3509_v42, %v2053_v62 }
 0x31c   :  { %v3611_v26 = vpop.f32.mrb[64].mxu1  ;;  %v2153_v29 = vadd.f32 %v3512_v34, %v2056_v47 }
 0x31d   :  { %v4929_v61 = vadd.f32 %v3611_v26, %v4892_v57  ;;  %v2190_v56 = vpop.f32.mrb[65].mxu1 }
 0x31e   :  { %v4932_v18 = vadd.f32 %v2190_v56, %v4886_v59  ;;  %v3612_v28 = vpop.f32.mrb[66].mxu1 }
 0x31f   :  { %v4935_v53 = vadd.f32 %v3612_v28, %v4894_v11  ;;  %v2193_v17 = vpop.f32.mrb[67].mxu1  ;;  %v2278_v59 = vmul.f32 %v4929_v61, %v4929_v61 }
 0x320   :  { %v4938_v5 = vadd.f32 %v2193_v17, %v4888_v8  ;;  %v2276_v23 = vmul.f32 %v4932_v18, %v4932_v18 }
 0x321   :  { %v2279_v25 = vmul.f32 %v4935_v53, %v4935_v53 }
 0x322   :  { %v2255_v13 = vadd.f32 %v4938_v5, %v4932_v18  ;;  %v2277_v57 = vmul.f32 %v4938_v5, %v4938_v5 }
 0x324   :  { %v2256_v39 = vadd.f32 %v2255_v13, %v4929_v61  ;;  %v2292_v11 = vadd.f32 %v2277_v57, %v2276_v23  ;;  %v3615_v32 = vpop.f32.mrb[68].mxu1 }
 0x325   :  { %v4950_v15 = vadd.f32 %v3615_v32, %v4904_v7  ;;  %v2206_v8 = vpop.f32.mrb[69].mxu1 }
 0x326   :  { %v2293_v33 = vadd.f32 %v2292_v11, %v2278_v59  ;;  %v4955_v55 = vadd.f32 %v2206_v8, %v4898_v58  ;;  %v2257_v63 = vadd.f32 %v2256_v39, %v4935_v53  ;;  %v3616_v3 = vpop.f32.mrb[70].mxu1 }
 0x327   :  { %v4959_v1 = vadd.f32 %v3616_v3, %v4906_v19  ;;  %v2209_v35 = vpop.f32.mrb[71].mxu1  ;;  %v2282_v19 = vmul.f32 %v4950_v15, %v4950_v15 }
 0x328   :  { %v2258_v46 = vadd.f32 %v2257_v63, %v4955_v55  ;;  %v2280_v7 = vmul.f32 %v4955_v55, %v4955_v55  ;;  %v2294_v10 = vadd.f32 %v2293_v33, %v2279_v25  ;;  %v4965_v9 = vadd.f32 %v2209_v35, %v4900_v6 }
 0x329   :  { %v2283_v6 = vmul.f32 %v4959_v1, %v4959_v1 }
 0x32a   :  { %v2295_v41 = vadd.f32 %v2294_v10, %v2280_v7  ;;  %v2259_v58 = vadd.f32 %v2258_v46, %v4965_v9  ;;  %v2281_v31 = vmul.f32 %v4965_v9, %v4965_v9 }
 0x32c   :  { %v2260_v54 = vadd.f32 %v2259_v58, %v4950_v15  ;;  %v2296_v14 = vadd.f32 %v2295_v41, %v2281_v31  ;;  %v3619_v60 = vpop.f32.mrb[72].mxu1 }
 0x32d   :  { %v4974_v36 = vadd.f32 %v3619_v60, %v4916_v22  ;;  %v2222_v44 = vpop.f32.mrb[73].mxu1 }
 0x32e   :  { %v2297_v51 = vadd.f32 %v2296_v14, %v2282_v19  ;;  %v4979_v48 = vadd.f32 %v2222_v44, %v4910_v52  ;;  %v2261_v4 = vadd.f32 %v2260_v54, %v4959_v1  ;;  %v3620_v30 = vpop.f32.mrb[74].mxu1 }
 0x32f   :  { %v4983_v42 = vadd.f32 %v3620_v30, %v4918_v21  ;;  %v2225_v20 = vpop.f32.mrb[75].mxu1  ;;  %v2286_v21 = vmul.f32 %v4974_v36, %v4974_v36 }
 0x330   :  { %v2262_v38 = vadd.f32 %v2261_v4, %v4979_v48  ;;  %v2284_v22 = vmul.f32 %v4979_v48, %v4979_v48  ;;  %v2298_v27 = vadd.f32 %v2297_v51, %v2283_v6  ;;  %v4989_v45 = vadd.f32 %v2225_v20, %v4912_v16  ;;  %v2253_v20 = vld [vmem:[%s5280_s5] sm:$0x1] }
 0x331   :  { %v2287_v16 = vmul.f32 %v4983_v42, %v4983_v42 }
 0x332   :  { %v2299_v34 = vadd.f32 %v2298_v27, %v2284_v22  ;;  %v2263_v52 = vadd.f32 %v2262_v38, %v4989_v45  ;;  %v2285_v24 = vmul.f32 %v4989_v45, %v4989_v45  ;;  %v2254_v27 = vld [vmem:[%s5281_s6] sm:$0x1] }
 0x334   :  { %v2264_v12 = vadd.f32 %v2263_v52, %v4974_v36  ;;  %v2300_v49 = vadd.f32 %v2299_v34, %v2285_v24  ;;  %v3623_v37 = vpop.f32.mrb[76].mxu1  ;;  %v5369_v52 = vld [vmem:[#allocation25_spill] sm:$0xff] }
 0x335   :  { %v4997_v40 = vadd.f32 %v3623_v37, %v2150_v0  ;;  %v2238_v62 = vpop.f32.mrb[77].mxu1 }
 0x336   :  { %v2301_v2 = vadd.f32 %v2300_v49, %v2286_v21  ;;  %v2239_v47 = vadd.f32 %v2238_v62, %v4922_v43  ;;  %v2265_v26 = vadd.f32 %v2264_v12, %v4983_v42  ;;  %v3624_v56 = vpop.f32.mrb[78].mxu1 }
 0x337   :  { %v5003_v28 = vadd.f32 %v3624_v56, %v2153_v29  ;;  %v2241_v17 = vpop.f32.mrb[79].mxu1  ;;  %v2290_v32 = vmul.f32 %v4997_v40, %v4997_v40 }
 0x338   :  { %v2266_v23 = vadd.f32 %v2265_v26, %v2239_v47  ;;  %v2288_v13 = vmul.f32 %v2239_v47, %v2239_v47  ;;  %v2302_v57 = vadd.f32 %v2301_v2, %v2287_v16  ;;  %v2242_v59 = vadd.f32 %v2241_v17, %v4924_v50 }
 0x339   :  { %v2291_v25 = vmul.f32 %v5003_v28, %v5003_v28 }
 0x33a   :  { %v2303_v0 = vadd.f32 %v2302_v57, %v2288_v13  ;;  %v2267_v39 = vadd.f32 %v2266_v23, %v2242_v59  ;;  %v2289_v11 = vmul.f32 %v2242_v59, %v2242_v59 }
 0x33c   :  { %v2268_v8 = vadd.f32 %v2267_v39, %v4997_v40  ;;  %v2304_v43 = vadd.f32 %v2303_v0, %v2289_v11 }
 0x33e   :  { %v2269_v29 = vadd.f32 %v2268_v8, %v5003_v28  ;;  %v2305_v33 = vadd.f32 %v2304_v43, %v2290_v32 }
 0x340   :  { %v2270_v63 = vrot.slane %v2269_v29, 4  ;;  %v2306_v3 = vadd.f32 %v2305_v33, %v2291_v25 }
 0x342   :  { %v2271_v35 = vadd.f32 %v2270_v63, %v2269_v29  ;;  %v2307_v46 = vrot.slane %v2306_v3, 4 }
 0x344   :  { %v2272_v50 = vrot.slane %v2271_v35, 2  ;;  %v2308_v7 = vadd.f32 %v2307_v46, %v2306_v3 }
 0x346   :  { %v2273_v10 = vadd.f32 %v2272_v50, %v2271_v35  ;;  %v2309_v41 = vrot.slane %v2308_v7, 2 }
 0x348   :  { %v2274_v58 = vrot.slane %v2273_v10, 1  ;;  %v2310_v31 = vadd.f32 %v2309_v41, %v2308_v7 }
 0x34a   :  { %v2275_v19 = vadd.f32 %v2274_v58, %v2273_v10  ;;  %v2311_v54 = vrot.slane %v2310_v31, 1 }
 0x34c   :  { %v2312_v14 = vadd.f32 %v2311_v54, %v2310_v31  ;;  %v2313_v60 = vmul.f32 0.0078125, %v2275_v19 }
 0x34e   :  { %v2314_v44 = vmul.f32 0.0078125, %v2312_v14  ;;  %v2315_v6 = vmul.f32 %v2313_v60, %v2313_v60 }
 0x350   :  { %v2316_v51 = vsub.f32 %v2314_v44, %v2315_v6 }
 0x352   :  { %v2317_v4 = vmax.f32 %v2316_v51, 0.0 }
 0x354   :  { %v2318_v30 = vadd.f32 1e-05, %v2317_v4 }
 0x356   :  { %3798 = vrsqrt.f32 %v2318_v30 }
 0x360   :  { %v3799_v38 = vpop.eup %3798 }
 0x361   :  { %v2320_v22 = vmul.f32 %v3799_v38, %v2253_v20 }
 0x363   :  { %v2321_v34 = vmul.f32 %v2320_v22, %v2313_v60  ;;  %v2327_v24 = vrot.slane %v2320_v22, %v5369_v52 }
 0x365   :  { %v2322_v21 = vsub.f32 %v2254_v27, %v2321_v34  ;;  %v2342_v12 = vmul.f32 %v2327_v24, %v2242_v59  ;;  %v2329_v49 = vmul.f32 %v2327_v24, %v4932_v18  ;;  %v2330_v37 = vmul.f32 %v2327_v24, %v4938_v5  ;;  %v5034_v27 = vpop.f32.mrb[80].mxu1 }
 0x366   :  { %v2331_v62 = vmul.f32 %v2327_v24, %v4929_v61  ;;  %v2332_v16 = vmul.f32 %v2327_v24, %v4935_v53  ;;  %v2333_v2 = vmul.f32 %v2327_v24, %v4955_v55  ;;  %v2334_v26 = vmul.f32 %v2327_v24, %v4965_v9 }
 0x367   :  { %v2349_v56 = vrot.slane %v2322_v21, %v5369_v52  ;;  %v2335_v17 = vmul.f32 %v2327_v24, %v4950_v15  ;;  %v2336_v23 = vmul.f32 %v2327_v24, %v4959_v1  ;;  %v2337_v13 = vmul.f32 %v2327_v24, %v4979_v48 }
 0x368   :  { %v2338_v18 = vmul.f32 %v2327_v24, %v4989_v45  ;;  %v2339_v5 = vmul.f32 %v2327_v24, %v4974_v36  ;;  %v2340_v61 = vmul.f32 %v2327_v24, %v4983_v42  ;;  %v2341_v57 = vmul.f32 %v2327_v24, %v2239_v47 }
 0x369   :  { %v2351_v53 = vadd.f32 %v2349_v56, %v2329_v49  ;;  %v2352_v59 = vadd.f32 %v2349_v56, %v2330_v37  ;;  %v2353_v55 = vadd.f32 %v2349_v56, %v2331_v62  ;;  %v2354_v0 = vadd.f32 %v2349_v56, %v2332_v16 }
 0x36a   :  { %v2355_v9 = vadd.f32 %v2349_v56, %v2333_v2  ;;  %v2356_v39 = vadd.f32 %v2349_v56, %v2334_v26  ;;  %v2357_v11 = vadd.f32 %v2349_v56, %v2335_v17  ;;  %v2358_v32 = vadd.f32 %v2349_v56, %v2336_v23 }
 0x36b   :  { %v2367_v15 = vmax.f32 %v2351_v53, 0.0  ;;  %v2368_v8 = vmax.f32 %v2352_v59, 0.0  ;;  %v2369_v1 = vmax.f32 %v2353_v55, 0.0  ;;  %v2370_v43 = vmax.f32 %v2354_v0, 0.0 }
 0x36c   :  { %v2371_v48 = vmax.f32 %v2355_v9, 0.0  ;;  %v2372_v25 = vmax.f32 %v2356_v39, 0.0  ;;  %v2373_v45 = vmax.f32 %v2357_v11, 0.0  ;;  %v2374_v29 = vmax.f32 %v2358_v32, 0.0 }
 0x36d   :  { %v2383_v36 = vpack.c.bf16 %v2368_v8, %v2367_v15  ;;  %v2384_v33 = vpack.c.bf16 %v2370_v43, %v2369_v1  ;;  %v2359_v42 = vadd.f32 %v2349_v56, %v2337_v13  ;;  %v2360_v47 = vadd.f32 %v2349_v56, %v2338_v18 }
 0x36e   :  { %v2385_v63 = vpack.c.bf16 %v2372_v25, %v2371_v48  ;;  %v2386_v3 = vpack.c.bf16 %v2374_v29, %v2373_v45  ;;  %v2361_v35 = vadd.f32 %v2349_v56, %v2339_v5  ;;  %v2362_v46 = vadd.f32 %v2349_v56, %v2340_v61 }
 0x36f   :  { %3641 = vmatprep.mubr.bf16.mxu0 %v2383_v36  ;;  %v2375_v50 = vmax.f32 %v2359_v42, 0.0  ;;  %v2376_v7 = vmax.f32 %v2360_v47, 0.0  ;;  %v2363_v10 = vadd.f32 %v2349_v56, %v2341_v57  ;;  %v2364_v41 = vadd.f32 %v2349_v56, %v2342_v12 }
 0x370   :  { %3642 = vmatmul.mubr.bf16.vlgmr.msra.gmra.mrb[80].mxu0 %v2384_v33  ;;  %v2377_v58 = vmax.f32 %v2361_v35, 0.0  ;;  %v2378_v31 = vmax.f32 %v2362_v46, 0.0  ;;  %v2343_v19 = vmul.f32 %v2327_v24, %v4997_v40  ;;  %v2344_v54 = vmul.f32 %v2327_v24, %v5003_v28  ;;  %v5036_v40 = vpop.f32.mrb[81].mxu1 }
 0x371   :  { %3645 = vmatprep.mubr.bf16.mxu0 %v2385_v63  ;;  %v2387_v14 = vpack.c.bf16 %v2376_v7, %v2375_v50  ;;  %v2379_v60 = vmax.f32 %v2363_v10, 0.0  ;;  %v2380_v44 = vmax.f32 %v2364_v41, 0.0  ;;  %v2850_v28 = vmul.f32 %v5036_v40, %v5036_v40  ;;  %v5040_v34 = vpop.f32.mrb[82].mxu1 }
 0x372   :  { %v2388_v6 = vpack.c.bf16 %v2378_v31, %v2377_v58  ;;  %v2365_v51 = vadd.f32 %v2349_v56, %v2343_v19  ;;  %v2366_v4 = vadd.f32 %v2349_v56, %v2344_v54  ;;  %v5042_v24 = vpop.f32.mrb[83].mxu1  ;;  %v2852_v21 = vmul.f32 %v5034_v27, %v5034_v27 }
 0x373   :  { %v2389_v30 = vpack.c.bf16 %v2380_v44, %v2379_v60  ;;  %v2829_v12 = vadd.f32 %v5042_v24, %v5036_v40  ;;  %v2851_v49 = vmul.f32 %v5042_v24, %v5042_v24  ;;  %v2853_v37 = vmul.f32 %v5040_v34, %v5040_v34  ;;  %v5053_v26 = vpop.f32.mrb[84].mxu1 }
 0x374   :  { %v2381_v20 = vmax.f32 %v2365_v51, 0.0  ;;  %v2382_v38 = vmax.f32 %v2366_v4, 0.0  ;;  %v5056_v17 = vpop.f32.mrb[85].mxu1  ;;  %v2856_v57 = vmul.f32 %v5053_v26, %v5053_v26 }
 0x375   :  { %v2830_v62 = vadd.f32 %v5034_v27, %v2829_v12  ;;  %v2866_v16 = vadd.f32 %v2851_v49, %v2850_v28  ;;  %v2854_v13 = vmul.f32 %v5056_v17, %v5056_v17  ;;  %v5061_v5 = vpop.f32.mrb[86].mxu1 }
 0x376   :  { %v2390_v22 = vpack.c.bf16 %v2382_v38, %v2381_v20  ;;  %v5063_v61 = vpop.f32.mrb[87].mxu1  ;;  %v2857_v0 = vmul.f32 %v5061_v5, %v5061_v5 }
 0x377   :  { %v2867_v2 = vadd.f32 %v2866_v16, %v2852_v21  ;;  %v2831_v56 = vadd.f32 %v5040_v34, %v2830_v62  ;;  %v2855_v55 = vmul.f32 %v5063_v61, %v5063_v61  ;;  %v5073_v32 = vpop.f32.mrb[88].mxu1 }
 0x378   :  { %3646 = vmatmul.mubr.bf16.gmra.mrb[84].mxu0 %v2386_v3  ;;  %v5076_v8 = vpop.f32.mrb[89].mxu1  ;;  %v2860_v29 = vmul.f32 %v5073_v32, %v5073_v32 }
 0x379   :  { %3649 = vmatprep.mubr.bf16.mxu0 %v2387_v14  ;;  %v2832_v23 = vadd.f32 %v2831_v56, %v5056_v17  ;;  %v2868_v18 = vadd.f32 %v2867_v2, %v2853_v37  ;;  %v2858_v43 = vmul.f32 %v5076_v8, %v5076_v8  ;;  %v5081_v25 = vpop.f32.mrb[90].mxu1 }
 0x37a   :  { %v5083_v45 = vpop.f32.mrb[91].mxu1  ;;  %v2861_v47 = vmul.f32 %v5081_v25, %v5081_v25 }
 0x37b   :  { %v2869_v53 = vadd.f32 %v2868_v18, %v2854_v13  ;;  %v2833_v59 = vadd.f32 %v2832_v23, %v5063_v61  ;;  %v2859_v42 = vmul.f32 %v5083_v45, %v5083_v45  ;;  %v5093_v46 = vpop.f32.mrb[92].mxu1 }
 0x37c   :  { %v5096_v7 = vpop.f32.mrb[93].mxu1  ;;  %v2864_v54 = vmul.f32 %v5093_v46, %v5093_v46 }
 0x37d   :  { %v2834_v9 = vadd.f32 %v5053_v26, %v2833_v59  ;;  %v2870_v39 = vadd.f32 %v2869_v53, %v2855_v55  ;;  %v2862_v41 = vmul.f32 %v5096_v7, %v5096_v7  ;;  %v5101_v31 = vpop.f32.mrb[94].mxu1 }
 0x37e   :  { %v2815_v19 = vpop.f32.mrb[95].mxu1 }
 0x37f   :  { %v2871_v11 = vadd.f32 %v2870_v39, %v2856_v57  ;;  %v2835_v15 = vadd.f32 %v5061_v5, %v2834_v9  ;;  %v2863_v44 = vmul.f32 %v2815_v19, %v2815_v19  ;;  %v2827_v9 = vld [vmem:[%s5286_s11] sm:$0x1] }
 0x380   :  { %3650 = vmatmul.mubr.bf16.gmra.mrb[88].mxu0 %v2388_v6  ;;  %v2865_v6 = vmul.f32 %v5101_v31, %v5101_v31 }
 0x381   :  { %3653 = vmatprep.mubr.bf16.mxu0 %v2389_v30  ;;  %v2836_v1 = vadd.f32 %v2835_v15, %v5076_v8  ;;  %v2872_v48 = vadd.f32 %v2871_v11, %v2857_v0  ;;  %v2828_v15 = vld [vmem:[%s5287_s12] sm:$0x1] }
 0x383   :  { %v2873_v36 = vadd.f32 %v2872_v48, %v2858_v43  ;;  %v2837_v33 = vadd.f32 %v2836_v1, %v5083_v45 }
 0x385   :  { %v2838_v63 = vadd.f32 %v5073_v32, %v2837_v33  ;;  %v2874_v3 = vadd.f32 %v2873_v36, %v2859_v42 }
 0x387   :  { %v2875_v35 = vadd.f32 %v2874_v3, %v2860_v29  ;;  %v2839_v50 = vadd.f32 %v5081_v25, %v2838_v63 }
 0x388   :  { %3654 = vmatmul.mubr.bf16.gmra.mrb[92].mxu0 %v2390_v22 }
 0x389   :  { %v2840_v10 = vadd.f32 %v2839_v50, %v5096_v7  ;;  %v2876_v58 = vadd.f32 %v2875_v35, %v2861_v47 }
 0x38b   :  { %v2877_v14 = vadd.f32 %v2876_v58, %v2862_v41  ;;  %v2841_v60 = vadd.f32 %v2840_v10, %v2815_v19 }
 0x38d   :  { %v2842_v51 = vadd.f32 %v5093_v46, %v2841_v60  ;;  %v2878_v4 = vadd.f32 %v2877_v14, %v2863_v44 }
 0x38f   :  { %v2843_v30 = vadd.f32 %v5101_v31, %v2842_v51  ;;  %v2879_v20 = vadd.f32 %v2878_v4, %v2864_v54 }
 0x391   :  { %v2844_v38 = vrot.slane %v2843_v30, 4  ;;  %v2880_v22 = vadd.f32 %v2879_v20, %v2865_v6 }
 0x393   :  { %v2845_v28 = vadd.f32 %v2844_v38, %v2843_v30  ;;  %v2881_v21 = vrot.slane %v2880_v22, 4 }
 0x395   :  { %v2846_v12 = vrot.slane %v2845_v28, 2  ;;  %v2882_v49 = vadd.f32 %v2881_v21, %v2880_v22 }
 0x397   :  { %v2847_v37 = vadd.f32 %v2846_v12, %v2845_v28  ;;  %v2883_v62 = vrot.slane %v2882_v49, 2 }
 0x399   :  { %v2848_v16 = vrot.slane %v2847_v37, 1  ;;  %v2884_v2 = vadd.f32 %v2883_v62, %v2882_v49 }
 0x39b   :  { %v2849_v56 = vadd.f32 %v2848_v16, %v2847_v37  ;;  %v2885_v23 = vrot.slane %v2884_v2, 1 }
 0x39d   :  { %v2886_v13 = vadd.f32 %v2885_v23, %v2884_v2  ;;  %v2887_v18 = vmul.f32 0.0078125, %v2849_v56 }
 0x39f   :  { %v2888_v57 = vmul.f32 0.0078125, %v2886_v13  ;;  %v2889_v53 = vmul.f32 %v2887_v18, %v2887_v18 }
 0x3a1   :  { %v2890_v59 = vsub.f32 %v2888_v57, %v2889_v53 }
 0x3a3   :  { %v2891_v55 = vmax.f32 %v2890_v59, 0.0 }
 0x3a5   :  { %v2892_v0 = vadd.f32 1e-05, %v2891_v55 }
 0x3a7   :  { %3800 = vrsqrt.f32 %v2892_v0 }
 0x3b1   :  { %v3801_v39 = vpop.eup %3800 }
 0x3b2   :  { %v2894_v11 = vmul.f32 %v3801_v39, %v2827_v9 }
 0x3b4   :  { %v2895_v1 = vmul.f32 %v2894_v11, %v2887_v18  ;;  %v2901_v43 = vrot.slane %v2894_v11, %v5369_v52 }
 0x3b6   :  { %v2896_v48 = vsub.f32 %v2828_v15, %v2895_v1  ;;  %v2916_v29 = vmul.f32 %v2901_v43, %v2815_v19  ;;  %v2903_v42 = vmul.f32 %v2901_v43, %v5036_v40  ;;  %v2904_v47 = vmul.f32 %v2901_v43, %v5042_v24 }
 0x3b7   :  { %v2905_v63 = vmul.f32 %v5034_v27, %v2901_v43  ;;  %v2906_v3 = vmul.f32 %v5040_v34, %v2901_v43  ;;  %v2907_v58 = vmul.f32 %v2901_v43, %v5056_v17  ;;  %v2908_v19 = vmul.f32 %v2901_v43, %v5063_v61 }
 0x3b8   :  { %v2923_v36 = vrot.slane %v2896_v48, %v5369_v52  ;;  %v2909_v40 = vmul.f32 %v5053_v26, %v2901_v43  ;;  %v2910_v24 = vmul.f32 %v5061_v5, %v2901_v43  ;;  %v2911_v60 = vmul.f32 %v2901_v43, %v5076_v8 }
 0x3b9   :  { %v2912_v44 = vmul.f32 %v2901_v43, %v5083_v45  ;;  %v2913_v17 = vmul.f32 %v5073_v32, %v2901_v43  ;;  %v2914_v61 = vmul.f32 %v5081_v25, %v2901_v43  ;;  %v2915_v26 = vmul.f32 %v2901_v43, %v5096_v7 }
 0x3ba   :  { %v5117_v33 = vadd.f32 %v2923_v36, %v2916_v29  ;;  %v5123_v35 = vadd.f32 %v2923_v36, %v2903_v42  ;;  %v5125_v50 = vadd.f32 %v2923_v36, %v2904_v47  ;;  %v5127_v10 = vadd.f32 %v2923_v36, %v2905_v63 }
 0x3bb   :  { %v5129_v41 = vadd.f32 %v2923_v36, %v2906_v3  ;;  %v5135_v54 = vadd.f32 %v2923_v36, %v2907_v58  ;;  %v5137_v27 = vadd.f32 %v2923_v36, %v2908_v19  ;;  %v5139_v34 = vadd.f32 %v2923_v36, %v2909_v40 }
 0x3bc   :  { %v5141_v14 = vadd.f32 %v2923_v36, %v2910_v24  ;;  %v2917_v5 = vmul.f32 %v5093_v46, %v2901_v43  ;;  %v2918_v6 = vmul.f32 %v5101_v31, %v2901_v43  ;;  %v5150_v51 = vadd.f32 %v2923_v36, %v2911_v60 }
 0x3bd   :  { %v5152_v4 = vadd.f32 %v2923_v36, %v2912_v44  ;;  %v5154_v30 = vadd.f32 %v2923_v36, %v2913_v17  ;;  %v5156_v20 = vadd.f32 %v2923_v36, %v2914_v61  ;;  %v5158_v8 = vadd.f32 %v2923_v36, %v2915_v26 }
 0x3be   :  { %v5160_v45 = vadd.f32 %v2923_v36, %v2917_v5  ;;  %v5162_v32 = vadd.f32 %v2923_v36, %v2918_v6 }
 0x443   :  { %v5164_v25 = vpop.f32.mrb[80].mxu0 }
 0x444   :  { %v5166_v7 = vpop.f32.mrb[81].mxu0  ;;  %v2577_v21 = vmul.f32 %v5164_v25, %v5164_v25 }
 0x445   :  { %v5168_v46 = vpop.f32.mrb[82].mxu0  ;;  %v2575_v38 = vmul.f32 %v5166_v7, %v5166_v7 }
 0x446   :  { %v5170_v31 = vpop.f32.mrb[83].mxu0  ;;  %v2578_v37 = vmul.f32 %v5168_v46, %v5168_v46 }
 0x447   :  { %v2554_v22 = vadd.f32 %v5170_v31, %v5166_v7  ;;  %v2576_v28 = vmul.f32 %v5170_v31, %v5170_v31 }
 0x449   :  { %v2555_v12 = vadd.f32 %v5164_v25, %v2554_v22  ;;  %v2591_v49 = vadd.f32 %v2576_v28, %v2575_v38 }
 0x44b   :  { %v2592_v62 = vadd.f32 %v2591_v49, %v2577_v21  ;;  %v5183_v16 = vpop.f32.mrb[84].mxu0  ;;  %v2556_v2 = vadd.f32 %v5168_v46, %v2555_v12 }
 0x44c   :  { %v5186_v56 = vpop.f32.mrb[85].mxu0  ;;  %v2581_v9 = vmul.f32 %v5183_v16, %v5183_v16 }
 0x44d   :  { %v2557_v23 = vadd.f32 %v2556_v2, %v5186_v56  ;;  %v2579_v13 = vmul.f32 %v5186_v56, %v5186_v56  ;;  %v2593_v18 = vadd.f32 %v2592_v62, %v2578_v37  ;;  %v5191_v57 = vpop.f32.mrb[86].mxu0 }
 0x44e   :  { %v5193_v53 = vpop.f32.mrb[87].mxu0  ;;  %v2582_v15 = vmul.f32 %v5191_v57, %v5191_v57 }
 0x44f   :  { %v2594_v59 = vadd.f32 %v2593_v18, %v2579_v13  ;;  %v2558_v55 = vadd.f32 %v2557_v23, %v5193_v53  ;;  %v2580_v0 = vmul.f32 %v5193_v53, %v5193_v53 }
 0x451   :  { %v2559_v39 = vadd.f32 %v5183_v16, %v2558_v55  ;;  %v2595_v11 = vadd.f32 %v2594_v59, %v2580_v0 }
 0x453   :  { %v2596_v1 = vadd.f32 %v2595_v11, %v2581_v9  ;;  %v5203_v43 = vpop.f32.mrb[88].mxu0  ;;  %v2560_v48 = vadd.f32 %v5191_v57, %v2559_v39 }
 0x454   :  { %v5206_v29 = vpop.f32.mrb[89].mxu0  ;;  %v2585_v24 = vmul.f32 %v5203_v43, %v5203_v43 }
 0x455   :  { %v2561_v36 = vadd.f32 %v2560_v48, %v5206_v29  ;;  %v2583_v42 = vmul.f32 %v5206_v29, %v5206_v29  ;;  %v2597_v47 = vadd.f32 %v2596_v1, %v2582_v15  ;;  %v5211_v63 = vpop.f32.mrb[90].mxu0 }
 0x456   :  { %v5213_v3 = vpop.f32.mrb[91].mxu0  ;;  %v2586_v17 = vmul.f32 %v5211_v63, %v5211_v63 }
 0x457   :  { %v2598_v58 = vadd.f32 %v2597_v47, %v2583_v42  ;;  %v2562_v19 = vadd.f32 %v2561_v36, %v5213_v3  ;;  %v2584_v40 = vmul.f32 %v5213_v3, %v5213_v3 }
 0x459   :  { %v2563_v60 = vadd.f32 %v5203_v43, %v2562_v19  ;;  %v2599_v44 = vadd.f32 %v2598_v58, %v2584_v40 }
 0x45b   :  { %v2600_v61 = vadd.f32 %v2599_v44, %v2585_v24  ;;  %v3655_v26 = vpop.f32.mrb[92].mxu0  ;;  %v2564_v5 = vadd.f32 %v5211_v63, %v2563_v60 }
 0x45c   :  { %v2537_v6 = vpop.f32.mrb[93].mxu0  ;;  %v2589_v2 = vmul.f32 %v3655_v26, %v3655_v26 }
 0x45d   :  { %v2565_v38 = vadd.f32 %v2564_v5, %v2537_v6  ;;  %v2587_v22 = vmul.f32 %v2537_v6, %v2537_v6  ;;  %v2601_v28 = vadd.f32 %v2600_v61, %v2586_v17  ;;  %v3656_v21 = vpop.f32.mrb[94].mxu0 }
 0x45e   :  { %v2540_v12 = vpop.f32.mrb[95].mxu0  ;;  %v2590_v18 = vmul.f32 %v3656_v21, %v3656_v21 }
 0x45f   :  { %v2602_v49 = vadd.f32 %v2601_v28, %v2587_v22  ;;  %v2566_v37 = vadd.f32 %v2565_v38, %v2540_v12  ;;  %v2588_v62 = vmul.f32 %v2540_v12, %v2540_v12  ;;  %v2552_v38 = vld [vmem:[%s5283_s8] sm:$0x1]  ;;  %s3954_s8 = smov [#allocation11]  }
 0x461   :  { %v2567_v23 = vadd.f32 %v3655_v26, %v2566_v37  ;;  %v2603_v13 = vadd.f32 %v2602_v49, %v2588_v62  ;;  %v2553_v49 = vld [vmem:[%s5284_s9] sm:$0x1]  ;;  %s2994_s9 = sshll.u32 %s3954_s8, 4  ;;  %s2995_s9 = int_to_ptr.vmem [resolvable:$true] %s2994_s9 }
 0x462   :  { %s3914_s14 = scalar_lea.vmem %s2995_s9, 2048  ;;  %p3919_p13 = scmp.lt.s32.totalorder %s2995_s9, %s2995_s9 }
 0x463   :  { %v2568_v59 = vadd.f32 %v3656_v21, %v2567_v23  ;;  %v2604_v55 = vadd.f32 %v2603_v13, %v2589_v2  ;;  %p3915_p12 = scmp.ne.s32.totalorder %s2995_s9, %s3914_s14  ;;  %p3920_p0 = scmp.lt.s32.totalorder %s3914_s14, %s3914_s14 }
 0x465   :  { %v2569_v0 = vrot.slane %v2568_v59, 4  ;;  %v2605_v9 = vadd.f32 %v2604_v55, %v2590_v18  ;;  %p3921_p1 = por %p3920_p0, %p3919_p13 }
 0x467   :  { %v2570_v39 = vadd.f32 %v2569_v0, %v2568_v59  ;;  %v2606_v11 = vrot.slane %v2605_v9, 4  ;;  %p3922_p2 = pnand %p3921_p1, %p3915_p12 }
 0x469   :  { %v2571_v15 = vrot.slane %v2570_v39, 2  ;;  %v2607_v1 = vadd.f32 %v2606_v11, %v2605_v9 }
 0x46b   :  { %v2572_v48 = vadd.f32 %v2571_v15, %v2570_v39  ;;  %v2608_v36 = vrot.slane %v2607_v1, 2 }
 0x46d   :  { %v2573_v42 = vrot.slane %v2572_v48, 1  ;;  %v2609_v47 = vadd.f32 %v2608_v36, %v2607_v1 }
 0x46f   :  { %v2574_v58 = vadd.f32 %v2573_v42, %v2572_v48  ;;  %v2610_v19 = vrot.slane %v2609_v47, 1 }
 0x471   :  { %v2611_v40 = vadd.f32 %v2610_v19, %v2609_v47  ;;  %v2612_v24 = vmul.f32 0.0078125, %v2574_v58 }
 0x473   :  { %v2613_v60 = vmul.f32 0.0078125, %v2611_v40  ;;  %v2614_v44 = vmul.f32 %v2612_v24, %v2612_v24 }
 0x475   :  { %v2615_v17 = vsub.f32 %v2613_v60, %v2614_v44 }
 0x477   :  { %v2616_v61 = vmax.f32 %v2615_v17, 0.0 }
 0x479   :  { %v2617_v5 = vadd.f32 1e-05, %v2616_v61 }
 0x47b   :  { %3802 = vrsqrt.f32 %v2617_v5 }
 0x485   :  { %v3803_v22 = vpop.eup %3802 }
 0x486   :  { %v2619_v28 = vmul.f32 %v3803_v22, %v2552_v38 }
 0x488   :  { %v2620_v37 = vmul.f32 %v2619_v28, %v2612_v24  ;;  %v2626_v62 = vrot.slane %v2619_v28, %v5369_v52 }
 0x48a   :  { %v2621_v2 = vsub.f32 %v2553_v49, %v2620_v37  ;;  %v2641_v23 = vmul.f32 %v2626_v62, %v2540_v12  ;;  %v2628_v13 = vmul.f32 %v2626_v62, %v5166_v7  ;;  %v2629_v18 = vmul.f32 %v2626_v62, %v5170_v31 }
 0x48b   :  { %v2630_v59 = vmul.f32 %v5164_v25, %v2626_v62  ;;  %v2631_v55 = vmul.f32 %v5168_v46, %v2626_v62  ;;  %v2632_v0 = vmul.f32 %v2626_v62, %v5186_v56  ;;  %v2633_v9 = vmul.f32 %v2626_v62, %v5193_v53 }
 0x48c   :  { %v2648_v39 = vrot.slane %v2621_v2, %v5369_v52  ;;  %v2634_v11 = vmul.f32 %v5183_v16, %v2626_v62  ;;  %v2635_v15 = vmul.f32 %v5191_v57, %v2626_v62  ;;  %v2636_v12 = vmul.f32 %v2626_v62, %v5206_v29 }
 0x48d   :  { %v2637_v7 = vmul.f32 %v2626_v62, %v5213_v3  ;;  %v2638_v31 = vmul.f32 %v5203_v43, %v2626_v62  ;;  %v2639_v25 = vmul.f32 %v5211_v63, %v2626_v62  ;;  %v2640_v1 = vmul.f32 %v2626_v62, %v2537_v6 }
 0x48e   :  { %v2663_v46 = vadd.f32 %v2648_v39, %v2641_v23  ;;  %v2642_v48 = vmul.f32 %v3655_v26, %v2626_v62  ;;  %v2643_v56 = vmul.f32 %v3656_v21, %v2626_v62  ;;  %v2650_v36 = vadd.f32 %v2648_v39, %v2628_v13 }
 0x48f   :  { %v2651_v53 = vadd.f32 %v2648_v39, %v2629_v18  ;;  %v2652_v42 = vadd.f32 %v2648_v39, %v2630_v59  ;;  %v2653_v52 = vadd.f32 %v2648_v39, %v2631_v55  ;;  %v2654_v47 = vadd.f32 %v2648_v39, %v2632_v0 }
 0x490   :  { %v2954_v16 = vadd.f32 %v5117_v33, %v2663_v46  ;;  %v2655_v57 = vadd.f32 %v2648_v39, %v2633_v9  ;;  %v2656_v58 = vadd.f32 %v2648_v39, %v2634_v11  ;;  %v2657_v29 = vadd.f32 %v2648_v39, %v2635_v15 }
 0x491   :  { %v2658_v19 = vadd.f32 %v2648_v39, %v2636_v12  ;;  %v2659_v3 = vadd.f32 %v2648_v39, %v2637_v7  ;;  %v2660_v40 = vadd.f32 %v2648_v39, %v2638_v31  ;;  %v2661_v43 = vadd.f32 %v2648_v39, %v2639_v25 }
 0x492   :  { %v2970_v24 = vmax.f32 %v2954_v16, 0.0  ;;  %v2662_v63 = vadd.f32 %v2648_v39, %v2640_v1  ;;  %v2664_v6 = vadd.f32 %v2648_v39, %v2642_v48  ;;  %v2665_v60 = vadd.f32 %v2648_v39, %v2643_v56 }
 0x493   :  { %v2941_v26 = vadd.f32 %v5123_v35, %v2650_v36  ;;  %v2942_v21 = vadd.f32 %v5125_v50, %v2651_v53  ;;  %v2943_v44 = vadd.f32 %v5127_v10, %v2652_v42  ;;  %v2944_v17 = vadd.f32 %v5129_v41, %v2653_v52 }
 0x494   :  { %2986 = vst [vmem:[#allocation11 + $0x68] sm:$0xff] %v2970_v24  ;;  %v2945_v33 = vadd.f32 %v5135_v54, %v2654_v47  ;;  %v2946_v61 = vadd.f32 %v5137_v27, %v2655_v57  ;;  %v2947_v5 = vadd.f32 %v5139_v34, %v2656_v58  ;;  %v2948_v38 = vadd.f32 %v5141_v14, %v2657_v29 }
 0x495   :  { %v2949_v22 = vadd.f32 %v5150_v51, %v2658_v19  ;;  %v2950_v28 = vadd.f32 %v5152_v4, %v2659_v3  ;;  %v2951_v35 = vadd.f32 %v5154_v30, %v2660_v40  ;;  %v2952_v50 = vadd.f32 %v5156_v20, %v2661_v43 }
 0x496   :  { %v2953_v10 = vadd.f32 %v5158_v8, %v2662_v63  ;;  %v2955_v41 = vadd.f32 %v5160_v45, %v2664_v6  ;;  %v2956_v54 = vadd.f32 %v5162_v32, %v2665_v60  ;;  %v2957_v49 = vmax.f32 %v2941_v26, 0.0 }
 0x497   :  { %v2958_v27 = vmax.f32 %v2942_v21, 0.0  ;;  %v2959_v37 = vmax.f32 %v2943_v44, 0.0  ;;  %v2960_v34 = vmax.f32 %v2944_v17, 0.0  ;;  %v2961_v62 = vmax.f32 %v2945_v33, 0.0 }
 0x498   :  { %v2962_v14 = vmax.f32 %v2946_v61, 0.0  ;;  %v2963_v51 = vmax.f32 %v2947_v5, 0.0  ;;  %v2964_v4 = vmax.f32 %v2948_v38, 0.0  ;;  %v2965_v2 = vmax.f32 %v2949_v22, 0.0  ;;  %2973 = vst [vmem:[#allocation11] sm:$0xff] %v2957_v49 }
 0x499   :  { %v2966_v30 = vmax.f32 %v2950_v28, 0.0  ;;  %v2967_v20 = vmax.f32 %v2951_v35, 0.0  ;;  %v2968_v23 = vmax.f32 %v2952_v50, 0.0  ;;  %v2969_v8 = vmax.f32 %v2953_v10, 0.0  ;;  %2974 = vst [vmem:[#allocation11 + $0x8] sm:$0xff] %v2958_v27  ;;  %2975 = vst [vmem:[#allocation11 + $0x10] sm:$0xff] %v2959_v37 }
 0x49a   :  { %2976 = vst [vmem:[#allocation11 + $0x18] sm:$0xff] %v2960_v34  ;;  %2977 = vst [vmem:[#allocation11 + $0x20] sm:$0xff] %v2961_v62  ;;  %v2971_v45 = vmax.f32 %v2955_v41, 0.0  ;;  %v2972_v32 = vmax.f32 %v2956_v54, 0.0 }
 0x49b   :  { %2978 = vst [vmem:[#allocation11 + $0x28] sm:$0xff] %v2962_v14  ;;  %2979 = vst [vmem:[#allocation11 + $0x30] sm:$0xff] %v2963_v51 }
 0x49c   :  { %2980 = vst [vmem:[#allocation11 + $0x38] sm:$0xff] %v2964_v4  ;;  %2981 = vst [vmem:[#allocation11 + $0x40] sm:$0xff] %v2965_v2 }
 0x49d   :  { %2982 = vst [vmem:[#allocation11 + $0x48] sm:$0xff] %v2966_v30  ;;  %2983 = vst [vmem:[#allocation11 + $0x50] sm:$0xff] %v2967_v20 }
 0x49e   :  { %2984 = vst [vmem:[#allocation11 + $0x58] sm:$0xff] %v2968_v23  ;;  %2985 = vst [vmem:[#allocation11 + $0x60] sm:$0xff] %v2969_v8 }
 0x49f   :  { %2987 = vst [vmem:[#allocation11 + $0x70] sm:$0xff] %v2971_v45  ;;  %2988 = vst [vmem:[#allocation11 + $0x78] sm:$0xff] %v2972_v32 }
 0x4a0   :  { %3925 = shalt.err (!%p3922_p2)
}
 0x4a1   :  { %s3926_s26 = scalar_lea.hbm %s5288_s13, 2048 }
 0x4a2   :  { %p3927_p3 = scmp.ne.s32.totalorder %s5288_s13, %s3926_s26  ;;  %p3930_p4 = scmp.lt.u32.totalorder %s3926_s26, %s5288_s13 }
 0x4a4   :  { %p3932_p5 = pnand %p3930_p4, %p3927_p3 }
 0x4a6   :  { %3935 = shalt.err (!%p3932_p5)
}
 0x4a7   :  { %3000 = dma.vmem_to_hbm [thread:$0]  %s2995_s9, 2048, %s5288_s13, [#allocation4], %s3949_s7, %s3949_s7, %s3950_s23  }
 0x4a8   :  { %3942 = dma.done.wait [#allocation4], 2048  }
 0x4a9   :  { %3943 = vsyncadd [#allocation4], 4294965248 }
 0x4aa   :  { %3004 = vsyncpa [#allocation3], 1 }
 0x4ab   :  { %3005 = vsyncpa [#allocation6], 1 }
 0x4ac   :  { %3006 = vsyncpa [#allocation9], 1 }
 0x4ad   :  { %3007 = vsyncpa [#allocation4], 1 }

</bundles_post_ra>
